<compile_context>
chip_gen: v7x
topology: tpu7x:2x2x1
jax: 0.10.0
libtpu: 0.0.40
codegen_flags: <defaults>
</compile_context>

<pallas_src>
import jax
import jax.numpy as jnp
import numpy as np
from jax import lax
from jax.experimental import pallas as pl
from jax.experimental.pallas import tpu as pltpu


# ----------------------------------------------------------------------------
# Fused Pallas kernel: stem conv -> residual basic block -> GAP -> FC
# ----------------------------------------------------------------------------
def _make_fused_kernel(B, H, W, cin, c):
    M = B * H   # image rows stacked on the sublane axis
    L = W * c   # lane-dense activation width (x folded together with channels)

    def kernel(x_ref, wb0_ref, b0_ref, wb1_ref, b1_ref, wb2_ref, b2_ref,
               shift_ref, pool_ref, rfc_ref, bfc_ref, o_ref):
        # Row-shift matrices (per-image zero y-halo baked in at prep time):
        # s_dn picks input row y-1, s_up picks row y+1, zero at image edges.
        s_dn = shift_ref[0]
        s_up = shift_ref[1]

        def conv(a, wb_ref, b_ref):
            """3x3 'SAME' conv in the lane-dense (B*H, W*cin) layout.

            dx taps + x zero-padding are folded into the banded weights
            wb_ref[ky] of shape (W*cin, W*cout); dy taps are row-shifted
            activations.  Everything is MXU work - no im2col copies.
            """
            a_dn = jnp.dot(s_dn, a, preferred_element_type=jnp.float32)
            a_up = jnp.dot(s_up, a, preferred_element_type=jnp.float32)
            acc = jnp.dot(a_dn, wb_ref[0], preferred_element_type=jnp.float32)
            acc = acc + jnp.dot(a, wb_ref[1], preferred_element_type=jnp.float32)
            acc = acc + jnp.dot(a_up, wb_ref[2], preferred_element_type=jnp.float32)
            return acc + b_ref[...]

        x = x_ref[...]                                        # (M, W*cin)
        # Stem conv (BN scale already folded into the weights) + ReLU.
        h = jnp.maximum(conv(x, wb0_ref, b0_ref), 0.0)        # (M, L)
        # Residual basic block: conv+ReLU, conv + skip + ReLU.
        h1 = jnp.maximum(conv(h, wb1_ref, b1_ref), 0.0)
        h2 = jnp.maximum(conv(h1, wb2_ref, b2_ref) + h, 0.0)

        # GAP + FC as two tiny MXU matmuls, consistent with the lane layout:
        #   pooled[b, x*c+ci] = (1/(H*W)) * sum_y h2[b*H+y, x*c+ci]
        #   logit[b]          = sum_{x,ci} pooled[b, x*c+ci] * w_fc[ci] + b_fc
        pooled = jnp.dot(pool_ref[...], h2,
                         preferred_element_type=jnp.float32)  # (B, L)
        o_ref[...] = (jnp.dot(pooled, rfc_ref[...],
                              preferred_element_type=jnp.float32)
                      + bfc_ref[0, 0])

    return kernel


@jax.jit
def sil_forward(x_nchw, fp):
    """SILmodel.forward (non-gmic branch): M = feature_extractor(x); M.view(B,-1)."""
    B, cin, H, W = x_nchw.shape
    c = fp["rfc"].shape[0] // W
    # NCHW -> lane-dense (B*H, W*cin): x and channels together on the lane axis.
    # TODO(synk): at real sizes fold this transpose into the kernel's first
    # gather (or accept NHWC input) to avoid the extra HBM pass.
    x_lanes = jnp.transpose(x_nchw, (0, 2, 3, 1)).astype(jnp.float32)
    x_lanes = x_lanes.reshape(B * H, W * cin)

    args = (x_lanes, fp["wb0"], fp["b0"], fp["wb1"], fp["b1"], fp["wb2"],
            fp["b2"], fp["shifts"], fp["pool"], fp["rfc"], fp["bfc"])

    M, L = B * H, W * c
    conv_flops = lambda k: 2 * (2 * M * M * k) + 3 * (2 * M * k * L)
    flops = conv_flops(W * cin) + 2 * conv_flops(L) + 2 * B * M * L + 2 * B * L
    bytes_accessed = sum(int(np.prod(a.shape)) * a.dtype.itemsize
                         for a in args) + B * 4

    kernel = _make_fused_kernel(B, H, W, cin, c)
    return pl.pallas_call(
        kernel,
        out_shape=jax.ShapeDtypeStruct((B, 1), jnp.float32),
        in_specs=[pl.BlockSpec(memory_space=pltpu.MemorySpace.VMEM)] * 10
        + [pl.BlockSpec(memory_space=pltpu.MemorySpace.SMEM)],
        out_specs=pl.BlockSpec(memory_space=pltpu.MemorySpace.VMEM),
        cost_estimate=pl.CostEstimate(flops=int(flops), transcendentals=0,
                                      bytes_accessed=int(bytes_accessed)),
    )(*args)


# ----------------------------------------------------------------------------
# One-time parameter preparation (constant folds, no per-call runtime cost)
# ----------------------------------------------------------------------------
def prepare_params(params, B, H, W):
    cin = params["w0"].shape[2]
    c = params["w0"].shape[3]

    def band(w, s):
        # Fold the BN scale, then bake the three dx taps (and the 'SAME'
        # x-padding) into a banded (W*cin, W*cout) matrix per dy tap.
        w = np.asarray(w, np.float32) * np.asarray(s, np.float32).reshape(1, 1, 1, -1)
        ci, co = w.shape[2], w.shape[3]
        wb = np.zeros((3, W * ci, W * co), np.float32)
        for ky in range(3):
            for xo in range(W):
                for kx in range(3):
                    xi = xo + kx - 1
                    if 0 <= xi < W:
                        wb[ky, xi * ci:(xi + 1) * ci, xo * co:(xo + 1) * co] = w[ky, kx]
        return jnp.asarray(wb)

    def lane_bias(b):
        # Per-channel bias tiled across the W lane blocks: (1, W*c).
        return jnp.asarray(np.tile(np.asarray(b, np.float32).reshape(1, -1), (1, W)))

    M = B * H
    # Row-shift matrices with the per-image zero y-padding baked in (so rows
    # never leak across images in the stacked (B*H, .) layout).
    s_dn = np.zeros((M, M), np.float32)
    s_up = np.zeros((M, M), np.float32)
    for b in range(B):
        for y in range(H):
            r = b * H + y
            if y > 0:
                s_dn[r, r - 1] = 1.0
            if y < H - 1:
                s_up[r, r + 1] = 1.0

    # Per-image row mean (the x-mean's 1/W is folded in here); the sum over
    # x/channels happens against the W-tiled FC column below.
    pool = np.kron(np.eye(B, dtype=np.float32),
                   np.full((1, H), 1.0 / (H * W), np.float32))       # (B, B*H)
    rfc = np.tile(np.asarray(params["w_fc"], np.float32), (W, 1))    # (W*c, 1)

    return {
        "wb0": band(params["w0"], params["s0"]), "b0": lane_bias(params["b0"]),
        "wb1": band(params["w1"], params["s1"]), "b1": lane_bias(params["b1"]),
        "wb2": band(params["w2"], params["s2"]), "b2": lane_bias(params["b2"]),
        "shifts": jnp.asarray(np.stack([s_dn, s_up])),
        "pool": jnp.asarray(pool),
        "rfc": jnp.asarray(rfc),
        "bfc": jnp.asarray(params["b_fc"], jnp.float32).reshape(1, 1),
    }


# ----------------------------------------------------------------------------
# Pure-JAX reference (for correctness check)
# ----------------------------------------------------------------------------
def _ref_conv(x, w, s, b, relu, skip=None):
    y = lax.conv_general_dilated(
        x, w, window_strides=(1, 1), padding="SAME",
        dimension_numbers=("NHWC", "HWIO", "NHWC"),
    )
    y = y * s.reshape(1, 1, 1, -1) + b.reshape(1, 1, 1, -1)
    if skip is not None:
        y = y + skip
    if relu:
        y = jnp.maximum(y, 0.0)
    return y


def sil_forward_ref(x_nchw, params):
    x = jnp.transpose(x_nchw, (0, 2, 3, 1)).astype(jnp.float32)
    h = _ref_conv(x, params["w0"], params["s0"], params["b0"], True)
    h1 = _ref_conv(h, params["w1"], params["s1"], params["b1"], True)
    h2 = _ref_conv(h1, params["w2"], params["s2"], params["b2"], True, skip=h)
    pooled = jnp.mean(h2, axis=(1, 2))
    return pooled @ params["w_fc"] + params["b_fc"]


# ----------------------------------------------------------------------------
def init_params(key, cin=3, c=16):
    ks = jax.random.split(key, 8)
    scale = 0.1
    return {
        "w0": scale * jax.random.normal(ks[0], (3, 3, cin, c), jnp.float32),
        "s0": 1.0 + 0.05 * jax.random.normal(ks[1], (1, c), jnp.float32),
        "b0": 0.05 * jax.random.normal(ks[2], (1, c), jnp.float32),
        "w1": scale * jax.random.normal(ks[3], (3, 3, c, c), jnp.float32),
        "s1": jnp.ones((1, c), jnp.float32),
        "b1": jnp.zeros((1, c), jnp.float32),
        "w2": scale * jax.random.normal(ks[4], (3, 3, c, c), jnp.float32),
        "s2": jnp.ones((1, c), jnp.float32),
        "b2": jnp.zeros((1, c), jnp.float32),
        "w_fc": scale * jax.random.normal(ks[5], (c, 1), jnp.float32),
        "b_fc": 0.01 * jax.random.normal(ks[6], (1, 1), jnp.float32),
    }


if __name__ == "__main__":
    key = jax.random.PRNGKey(0)
    k_x, k_p = jax.random.split(key)

    B, Cin, H, W = 2, 3, 16, 16            # PyTorch NCHW input
    x = jax.random.normal(k_x, (B, Cin, H, W), jnp.float32)
    params = init_params(k_p, cin=Cin, c=16)
    fused_params = prepare_params(params, B, H, W)

    out = jax.block_until_ready(sil_forward(x, fused_params))
    ref = jax.block_until_ready(sil_forward_ref(x, params))

    assert out.shape == (B, 1), out.shape
    # Both paths run f32-on-MXU at default precision; tolerance covers the
    # differing contraction groupings (banded matmuls vs. direct conv).
    np.testing.assert_allclose(np.asarray(out), np.asarray(ref),
                               rtol=5e-3, atol=5e-3)
    print("KERNEL_OK")
</pallas_src>

<mosaic_0001>
module attributes {stable_mosaic.version = 11 : i64} {
  func.func @kernel(%arg0: memref<32x48xf32, #tpu.memory_space<vmem>>, %arg1: memref<3x48x256xf32, #tpu.memory_space<vmem>>, %arg2: memref<1x256xf32, #tpu.memory_space<vmem>>, %arg3: memref<3x256x256xf32, #tpu.memory_space<vmem>>, %arg4: memref<1x256xf32, #tpu.memory_space<vmem>>, %arg5: memref<3x256x256xf32, #tpu.memory_space<vmem>>, %arg6: memref<1x256xf32, #tpu.memory_space<vmem>>, %arg7: memref<2x32x32xf32, #tpu.memory_space<vmem>>, %arg8: memref<2x32xf32, #tpu.memory_space<vmem>>, %arg9: memref<256x1xf32, #tpu.memory_space<vmem>>, %arg10: memref<1x1xf32, #tpu.memory_space<smem>>, %arg11: memref<2x1xf32, #tpu.memory_space<vmem>>) attributes {dimension_semantics = [], scalar_prefetch = 0 : i64, scratch_operands = 0 : i64, tpu.core_type = #tpu.core_type<tc>} {
    %c0 = arith.constant 0 : index
    %c0_0 = arith.constant 0 : index
    %c0_1 = arith.constant 0 : index
    %0 = vector.load %arg7[%c0, %c0_0, %c0_1] : memref<2x32x32xf32, #tpu.memory_space<vmem>>, vector<1x32x32xf32>
    %1 = vector.shape_cast %0 : vector<1x32x32xf32> to vector<32x32xf32>
    %c1 = arith.constant 1 : index
    %c0_2 = arith.constant 0 : index
    %c0_3 = arith.constant 0 : index
    %2 = vector.load %arg7[%c1, %c0_2, %c0_3] : memref<2x32x32xf32, #tpu.memory_space<vmem>>, vector<1x32x32xf32>
    %3 = vector.shape_cast %2 : vector<1x32x32xf32> to vector<32x32xf32>
    %c0_4 = arith.constant 0 : index
    %c0_5 = arith.constant 0 : index
    %4 = vector.load %arg0[%c0_4, %c0_5] : memref<32x48xf32, #tpu.memory_space<vmem>>, vector<32x48xf32>
    %cst = arith.constant dense<0.000000e+00> : vector<32x48xf32>
    %5 = tpu.matmul %1, %4, %cst {dimension_numbers = #tpu.dot_dimension_numbers<[1], [0], [0], [1], [0, 0, 1, 1], [], []>} : vector<32x32xf32>, vector<32x48xf32>, vector<32x48xf32> -> vector<32x48xf32>
    %cst_6 = arith.constant dense<0.000000e+00> : vector<32x48xf32>
    %6 = tpu.matmul %3, %4, %cst_6 {dimension_numbers = #tpu.dot_dimension_numbers<[1], [0], [0], [1], [0, 0, 1, 1], [], []>} : vector<32x32xf32>, vector<32x48xf32>, vector<32x48xf32> -> vector<32x48xf32>
    %c0_7 = arith.constant 0 : index
    %c0_8 = arith.constant 0 : index
    %c0_9 = arith.constant 0 : index
    %7 = vector.load %arg1[%c0_7, %c0_8, %c0_9] : memref<3x48x256xf32, #tpu.memory_space<vmem>>, vector<1x48x256xf32>
    %8 = vector.shape_cast %7 : vector<1x48x256xf32> to vector<48x256xf32>
    %cst_10 = arith.constant dense<0.000000e+00> : vector<32x256xf32>
    %9 = tpu.matmul %5, %8, %cst_10 {dimension_numbers = #tpu.dot_dimension_numbers<[1], [0], [0], [1], [0, 0, 1, 1], [], []>} : vector<32x48xf32>, vector<48x256xf32>, vector<32x256xf32> -> vector<32x256xf32>
    %c1_11 = arith.constant 1 : index
    %c0_12 = arith.constant 0 : index
    %c0_13 = arith.constant 0 : index
    %10 = vector.load %arg1[%c1_11, %c0_12, %c0_13] : memref<3x48x256xf32, #tpu.memory_space<vmem>>, vector<1x48x256xf32>
    %11 = vector.shape_cast %10 : vector<1x48x256xf32> to vector<48x256xf32>
    %cst_14 = arith.constant dense<0.000000e+00> : vector<32x256xf32>
    %12 = tpu.matmul %4, %11, %cst_14 {dimension_numbers = #tpu.dot_dimension_numbers<[1], [0], [0], [1], [0, 0, 1, 1], [], []>} : vector<32x48xf32>, vector<48x256xf32>, vector<32x256xf32> -> vector<32x256xf32>
    %13 = arith.addf %9, %12 : vector<32x256xf32>
    %c2 = arith.constant 2 : index
    %c0_15 = arith.constant 0 : index
    %c0_16 = arith.constant 0 : index
    %14 = vector.load %arg1[%c2, %c0_15, %c0_16] : memref<3x48x256xf32, #tpu.memory_space<vmem>>, vector<1x48x256xf32>
    %15 = vector.shape_cast %14 : vector<1x48x256xf32> to vector<48x256xf32>
    %cst_17 = arith.constant dense<0.000000e+00> : vector<32x256xf32>
    %16 = tpu.matmul %6, %15, %cst_17 {dimension_numbers = #tpu.dot_dimension_numbers<[1], [0], [0], [1], [0, 0, 1, 1], [], []>} : vector<32x48xf32>, vector<48x256xf32>, vector<32x256xf32> -> vector<32x256xf32>
    %17 = arith.addf %13, %16 : vector<32x256xf32>
    %c0_18 = arith.constant 0 : index
    %c0_19 = arith.constant 0 : index
    %18 = vector.load %arg2[%c0_18, %c0_19] : memref<1x256xf32, #tpu.memory_space<vmem>>, vector<1x256xf32>
    %19 = vector.broadcast %18 : vector<1x256xf32> to vector<32x256xf32>
    %20 = arith.addf %17, %19 : vector<32x256xf32>
    %cst_20 = arith.constant 0.000000e+00 : f32
    %21 = vector.broadcast %cst_20 : f32 to vector<32x256xf32>
    %22 = arith.maximumf %20, %21 : vector<32x256xf32>
    %cst_21 = arith.constant dense<0.000000e+00> : vector<32x256xf32>
    %23 = tpu.matmul %1, %22, %cst_21 {dimension_numbers = #tpu.dot_dimension_numbers<[1], [0], [0], [1], [0, 0, 1, 1], [], []>} : vector<32x32xf32>, vector<32x256xf32>, vector<32x256xf32> -> vector<32x256xf32>
    %cst_22 = arith.constant dense<0.000000e+00> : vector<32x256xf32>
    %24 = tpu.matmul %3, %22, %cst_22 {dimension_numbers = #tpu.dot_dimension_numbers<[1], [0], [0], [1], [0, 0, 1, 1], [], []>} : vector<32x32xf32>, vector<32x256xf32>, vector<32x256xf32> -> vector<32x256xf32>
    %c0_23 = arith.constant 0 : index
    %c0_24 = arith.constant 0 : index
    %c0_25 = arith.constant 0 : index
    %25 = vector.load %arg3[%c0_23, %c0_24, %c0_25] : memref<3x256x256xf32, #tpu.memory_space<vmem>>, vector<1x256x256xf32>
    %26 = vector.shape_cast %25 : vector<1x256x256xf32> to vector<256x256xf32>
    %cst_26 = arith.constant dense<0.000000e+00> : vector<32x256xf32>
    %27 = tpu.matmul %23, %26, %cst_26 {dimension_numbers = #tpu.dot_dimension_numbers<[1], [0], [0], [1], [0, 0, 1, 1], [], []>} : vector<32x256xf32>, vector<256x256xf32>, vector<32x256xf32> -> vector<32x256xf32>
    %c1_27 = arith.constant 1 : index
    %c0_28 = arith.constant 0 : index
    %c0_29 = arith.constant 0 : index
    %28 = vector.load %arg3[%c1_27, %c0_28, %c0_29] : memref<3x256x256xf32, #tpu.memory_space<vmem>>, vector<1x256x256xf32>
    %29 = vector.shape_cast %28 : vector<1x256x256xf32> to vector<256x256xf32>
    %cst_30 = arith.constant dense<0.000000e+00> : vector<32x256xf32>
    %30 = tpu.matmul %22, %29, %cst_30 {dimension_numbers = #tpu.dot_dimension_numbers<[1], [0], [0], [1], [0, 0, 1, 1], [], []>} : vector<32x256xf32>, vector<256x256xf32>, vector<32x256xf32> -> vector<32x256xf32>
    %31 = arith.addf %27, %30 : vector<32x256xf32>
    %c2_31 = arith.constant 2 : index
    %c0_32 = arith.constant 0 : index
    %c0_33 = arith.constant 0 : index
    %32 = vector.load %arg3[%c2_31, %c0_32, %c0_33] : memref<3x256x256xf32, #tpu.memory_space<vmem>>, vector<1x256x256xf32>
    %33 = vector.shape_cast %32 : vector<1x256x256xf32> to vector<256x256xf32>
    %cst_34 = arith.constant dense<0.000000e+00> : vector<32x256xf32>
    %34 = tpu.matmul %24, %33, %cst_34 {dimension_numbers = #tpu.dot_dimension_numbers<[1], [0], [0], [1], [0, 0, 1, 1], [], []>} : vector<32x256xf32>, vector<256x256xf32>, vector<32x256xf32> -> vector<32x256xf32>
    %35 = arith.addf %31, %34 : vector<32x256xf32>
    %c0_35 = arith.constant 0 : index
    %c0_36 = arith.constant 0 : index
    %36 = vector.load %arg4[%c0_35, %c0_36] : memref<1x256xf32, #tpu.memory_space<vmem>>, vector<1x256xf32>
    %37 = vector.broadcast %36 : vector<1x256xf32> to vector<32x256xf32>
    %38 = arith.addf %35, %37 : vector<32x256xf32>
    %cst_37 = arith.constant 0.000000e+00 : f32
    %39 = vector.broadcast %cst_37 : f32 to vector<32x256xf32>
    %40 = arith.maximumf %38, %39 : vector<32x256xf32>
    %cst_38 = arith.constant dense<0.000000e+00> : vector<32x256xf32>
    %41 = tpu.matmul %1, %40, %cst_38 {dimension_numbers = #tpu.dot_dimension_numbers<[1], [0], [0], [1], [0, 0, 1, 1], [], []>} : vector<32x32xf32>, vector<32x256xf32>, vector<32x256xf32> -> vector<32x256xf32>
    %cst_39 = arith.constant dense<0.000000e+00> : vector<32x256xf32>
    %42 = tpu.matmul %3, %40, %cst_39 {dimension_numbers = #tpu.dot_dimension_numbers<[1], [0], [0], [1], [0, 0, 1, 1], [], []>} : vector<32x32xf32>, vector<32x256xf32>, vector<32x256xf32> -> vector<32x256xf32>
    %c0_40 = arith.constant 0 : index
    %c0_41 = arith.constant 0 : index
    %c0_42 = arith.constant 0 : index
    %43 = vector.load %arg5[%c0_40, %c0_41, %c0_42] : memref<3x256x256xf32, #tpu.memory_space<vmem>>, vector<1x256x256xf32>
    %44 = vector.shape_cast %43 : vector<1x256x256xf32> to vector<256x256xf32>
    %cst_43 = arith.constant dense<0.000000e+00> : vector<32x256xf32>
    %45 = tpu.matmul %41, %44, %cst_43 {dimension_numbers = #tpu.dot_dimension_numbers<[1], [0], [0], [1], [0, 0, 1, 1], [], []>} : vector<32x256xf32>, vector<256x256xf32>, vector<32x256xf32> -> vector<32x256xf32>
    %c1_44 = arith.constant 1 : index
    %c0_45 = arith.constant 0 : index
    %c0_46 = arith.constant 0 : index
    %46 = vector.load %arg5[%c1_44, %c0_45, %c0_46] : memref<3x256x256xf32, #tpu.memory_space<vmem>>, vector<1x256x256xf32>
    %47 = vector.shape_cast %46 : vector<1x256x256xf32> to vector<256x256xf32>
    %cst_47 = arith.constant dense<0.000000e+00> : vector<32x256xf32>
    %48 = tpu.matmul %40, %47, %cst_47 {dimension_numbers = #tpu.dot_dimension_numbers<[1], [0], [0], [1], [0, 0, 1, 1], [], []>} : vector<32x256xf32>, vector<256x256xf32>, vector<32x256xf32> -> vector<32x256xf32>
    %49 = arith.addf %45, %48 : vector<32x256xf32>
    %c2_48 = arith.constant 2 : index
    %c0_49 = arith.constant 0 : index
    %c0_50 = arith.constant 0 : index
    %50 = vector.load %arg5[%c2_48, %c0_49, %c0_50] : memref<3x256x256xf32, #tpu.memory_space<vmem>>, vector<1x256x256xf32>
    %51 = vector.shape_cast %50 : vector<1x256x256xf32> to vector<256x256xf32>
    %cst_51 = arith.constant dense<0.000000e+00> : vector<32x256xf32>
    %52 = tpu.matmul %42, %51, %cst_51 {dimension_numbers = #tpu.dot_dimension_numbers<[1], [0], [0], [1], [0, 0, 1, 1], [], []>} : vector<32x256xf32>, vector<256x256xf32>, vector<32x256xf32> -> vector<32x256xf32>
    %53 = arith.addf %49, %52 : vector<32x256xf32>
    %c0_52 = arith.constant 0 : index
    %c0_53 = arith.constant 0 : index
    %54 = vector.load %arg6[%c0_52, %c0_53] : memref<1x256xf32, #tpu.memory_space<vmem>>, vector<1x256xf32>
    %55 = vector.broadcast %54 : vector<1x256xf32> to vector<32x256xf32>
    %56 = arith.addf %53, %55 : vector<32x256xf32>
    %57 = arith.addf %56, %22 : vector<32x256xf32>
    %cst_54 = arith.constant 0.000000e+00 : f32
    %58 = vector.broadcast %cst_54 : f32 to vector<32x256xf32>
    %59 = arith.maximumf %57, %58 : vector<32x256xf32>
    %c0_55 = arith.constant 0 : index
    %c0_56 = arith.constant 0 : index
    %60 = vector.load %arg8[%c0_55, %c0_56] : memref<2x32xf32, #tpu.memory_space<vmem>>, vector<2x32xf32>
    %cst_57 = arith.constant dense<0.000000e+00> : vector<2x256xf32>
    %61 = tpu.matmul %60, %59, %cst_57 {dimension_numbers = #tpu.dot_dimension_numbers<[1], [0], [0], [1], [0, 0, 1, 1], [], []>} : vector<2x32xf32>, vector<32x256xf32>, vector<2x256xf32> -> vector<2x256xf32>
    %c0_58 = arith.constant 0 : index
    %c0_59 = arith.constant 0 : index
    %62 = vector.load %arg9[%c0_58, %c0_59] : memref<256x1xf32, #tpu.memory_space<vmem>>, vector<256x1xf32>
    %cst_60 = arith.constant dense<0.000000e+00> : vector<2x1xf32>
    %63 = tpu.matmul %61, %62, %cst_60 {dimension_numbers = #tpu.dot_dimension_numbers<[1], [0], [0], [1], [0, 0, 1, 1], [], []>} : vector<2x256xf32>, vector<256x1xf32>, vector<2x1xf32> -> vector<2x1xf32>
    %c0_61 = arith.constant 0 : index
    %c0_62 = arith.constant 0 : index
    %64 = memref.load %arg10[%c0_61, %c0_62] : memref<1x1xf32, #tpu.memory_space<smem>>
    %65 = vector.broadcast %64 : f32 to vector<2x1xf32>
    %66 = arith.addf %63, %65 : vector<2x1xf32>
    %c0_63 = arith.constant 0 : index
    %c0_64 = arith.constant 0 : index
    %67 = vector.load %arg11[%c0_63, %c0_64] : memref<2x1xf32, #tpu.memory_space<vmem>>, vector<2x1xf32>
    tpu.vector_store %arg11[%c0_63, %c0_64], %66 {strides = array<i32>} : memref<2x1xf32, #tpu.memory_space<vmem>>, vector<2x1xf32>,
    return
  }
}

</mosaic_0001>

<bundles_post_ra>
// kernel: sil_forward.1
= control target key start
LH: loop header
LB: loop body
LE: loop exit
PB: predicated region body
PF: predicated region fallthrough
CT: control target
= control target key end

     0   :  { %17 = vsyncpa [#allocation4], 0  ;;  %s3592_s0 = inlined_call_operand.vmem [shape: f32[32,48], index: 0, kind: input, shape index: {}]   ;;  %s3593_s1 = inlined_call_operand.vmem [shape: f32[3,48,256], index: 1, kind: input, shape index: {}]   ;;  %s3594_s2 = inlined_call_operand.vmem [shape: f32[1,256], index: 2, kind: input, shape index: {}]   ;;  %s3595_s3 = inlined_call_operand.hbm [shape: f32[3,256,256], index: 3, kind: input, shape index: {}]   ;;  %s3596_s4 = inlined_call_operand.vmem [shape: f32[1,256], index: 4, kind: input, shape index: {}]   ;;  %s3597_s5 = inlined_call_operand.hbm [shape: f32[3,256,256], index: 5, kind: input, shape index: {}]   ;;  %s3598_s6 = inlined_call_operand.vmem [shape: f32[1,256], index: 6, kind: input, shape index: {}]   ;;  %s3599_s7 = inlined_call_operand.vmem [shape: f32[2,32,32], index: 7, kind: input, shape index: {}]   ;;  %s3600_s8 = inlined_call_operand.vmem [shape: f32[2,32], index: 8, kind: input, shape index: {}]   ;;  %s3601_s9 = inlined_call_operand.vmem [shape: f32[256,1], index: 9, kind: input, shape index: {}]   ;;  %s3602_s10 = inlined_call_operand.<no memory space> [shape: f32[1,1], index: 10, kind: input, shape index: {}]   ;;  %s3603_s11 = inlined_call_operand.vmem [shape: f32[2,1], index: 11, kind: output, shape index: {}]  }
   0x1   :  { %18 = vsyncpa [#allocation6], 0  ;;  %s2959_s17 = smov [#allocation3]   ;;  %s2911_s21 = scalar_lea.hbm %s3595_s3, 24576 }
   0x2   :  { %s30_s18 = sshll.u32 %s2959_s17, 4  ;;  %p2912_p0 = scmp.ne.s32.totalorder %s3595_s3, %s2911_s21  ;;  %s31_s18 = int_to_ptr.vmem [resolvable:$true] %s30_s18 }
   0x3   :  { %p2915_p1 = scmp.lt.u32.totalorder %s2911_s21, %s3595_s3 }
   0x5   :  { %p2917_p2 = pnand %p2915_p1, %p2912_p0 }
   0x7   :  { %2920 = shalt.err (!%p2917_p2)
}
   0x8   :  { %s2921_s26 = scalar_lea.vmem %s31_s18, 24576  ;;  %p2926_p4 = scmp.lt.s32.totalorder %s31_s18, %s31_s18 }
   0x9   :  { %p2922_p3 = scmp.ne.s32.totalorder %s31_s18, %s2921_s26  ;;  %p2927_p5 = scmp.lt.s32.totalorder %s2921_s26, %s2921_s26 }
   0xb   :  { %p2928_p6 = por %p2927_p5, %p2926_p4 }
   0xd   :  { %p2929_p7 = pnand %p2928_p6, %p2922_p3 }
   0xf   :  { %2932 = shalt.err (!%p2929_p7)
}
  0x10   :  { %s2960_s27 = smov 256   ;;  %s2961_s28 = smov 16  }
  0x11   :  { %36 = dma.hbm_to_vmem [thread:$0]  %s3595_s3, 24576, %s31_s18, [#allocation4], %s2960_s27, %s2960_s27, %s2961_s28  }
  0x12   :  { %s2962_s12 = smov [#allocation5]   ;;  %s2933_s16 = scalar_lea.hbm %s3597_s5, 24576 }
  0x13   :  { %s44_s13 = sshll.u32 %s2962_s12, 4  ;;  %p2934_p8 = scmp.ne.s32.totalorder %s3597_s5, %s2933_s16  ;;  %s45_s13 = int_to_ptr.vmem [resolvable:$true] %s44_s13 }
  0x14   :  { %p2937_p9 = scmp.lt.u32.totalorder %s2933_s16, %s3597_s5 }
  0x16   :  { %p2939_p10 = pnand %p2937_p9, %p2934_p8 }
  0x18   :  { %2942 = shalt.err (!%p2939_p10)
}
  0x19   :  { %s2943_s22 = scalar_lea.vmem %s45_s13, 24576  ;;  %p2948_p12 = scmp.lt.s32.totalorder %s45_s13, %s45_s13 }
  0x1a   :  { %p2944_p11 = scmp.ne.s32.totalorder %s45_s13, %s2943_s22  ;;  %p2949_p13 = scmp.lt.s32.totalorder %s2943_s22, %s2943_s22 }
  0x1c   :  { %p2950_p0 = por %p2949_p13, %p2948_p12 }
  0x1e   :  { %p2951_p1 = pnand %p2950_p0, %p2944_p11 }
  0x20   :  { %2954 = shalt.err (!%p2951_p1)
}
  0x21   :  { %50 = dma.hbm_to_vmem [thread:$0]  %s3597_s5, 24576, %s45_s13, [#allocation6], %s2960_s27, %s2960_s27, %s2961_s28  }
  0x22   :  { %2955 = dma.done.wait [#allocation4], 24576  }
  0x23   :  { %2956 = vsyncadd [#allocation4], 4294942720 }
  0x24   :  { %2957 = dma.done.wait [#allocation6], 24576  }
  0x25   :  { %2958 = vsyncadd [#allocation6], 4294942720  ;;  %v2963_v0 = vmov 0.0   ;;  %vm80_vm0 = vcmask 261120   ;;  %v3052_v1 = vld [vmem:[%s3592_s0] sm:$0xff]  ;;  %v3057_v2 = vld [vmem:[%s3592_s0 + $0x8] sm:$0xff] }
  0x26   :  { %377 = vmatprep.mubr.f32.mxu0 %v2963_v0  ;;  %v3062_v3 = vld [vmem:[%s3592_s0 + $0x10] sm:$0xff]  ;;  %v2342_v4 = vpack.c.bf16 %v3057_v2, %v3052_v1  ;;  %v3069_v5 = vld [vmem:[%s3592_s0 + $0x18] sm:$0xff]  ;;  %v3074_v6 = vld [vmem:[%s3599_s7] sm:$0xff]  ;;  %vm300_vm1 = vcmask 392192   ;;  %vm2190_vm2 = vcmask 1024  }
  0x27   :  { %v2346_v7 = vpack.c.bf16 %v3069_v5, %v3062_v3  ;;  %2322 = vmatprep.mubr.msk.f32.mxu1 %vm80_vm0, %v3074_v6  ;;  %v2211_v8 = vld [vmem:[%s3593_s1 + $0x68] sm:$0xff]  ;;  %v2213_v9 = vld [vmem:[%s3593_s1 + $0x78] sm:$0xff]  ;;  %v2210_v10 = vld [vmem:[%s3593_s1 + $0x60] sm:$0xff] }
  0x28   :  { %2343 = vmatprep.subr.bf16.mxu1 %v2342_v4  ;;  %v2358_v11 = vpack.c.bf16 %v2213_v9, %v2211_v8  ;;  %v2212_v12 = vld [vmem:[%s3593_s1 + $0x70] sm:$0xff]  ;;  %v2215_v13 = vld [vmem:[%s3593_s1 + $0x88] sm:$0xff]  ;;  %v2217_v14 = vld [vmem:[%s3593_s1 + $0x98] sm:$0xff] }
  0x29   :  { %2345 = vmatpush3.bf16.msra.mxu1 %v2342_v4  ;;  %v2360_v15 = vpack.c.bf16 %v2212_v12, %v2210_v10  ;;  %v2362_v16 = vpack.c.bf16 %v2217_v14, %v2215_v13  ;;  %v2214_v17 = vld [vmem:[%s3593_s1 + $0x80] sm:$0xff]  ;;  %v2216_v18 = vld [vmem:[%s3593_s1 + $0x90] sm:$0xff]  ;;  %v2219_v19 = vld [vmem:[%s3593_s1 + $0xa8] sm:$0xff] }
  0x2a   :  { %2347 = vmatprep.subr.bf16.mxu1 %v2346_v7  ;;  %2359 = vmatprep.subr.bf16.mxu0 %v2358_v11  ;;  %v2221_v20 = vld [vmem:[%s3593_s1 + $0xb8] sm:$0xff]  ;;  %v3113_v21 = vld [vmem:[%s3599_s7 + $0x8] sm:$0xff]  ;;  %v3118_v22 = vld [vmem:[%s3599_s7 + $0x10] sm:$0xff]  ;;  %v2364_v23 = vpack.c.bf16 %v2216_v18, %v2214_v17 }
  0x2b   :  { %2361 = vmatpush1.bf16.msra.mxu0 %v2360_v15  ;;  %v2366_v24 = vpack.c.bf16 %v2221_v20, %v2219_v19  ;;  %v2218_v25 = vld [vmem:[%s3593_s1 + $0xa0] sm:$0xff]  ;;  %v2220_v26 = vld [vmem:[%s3593_s1 + $0xb0] sm:$0xff]  ;;  %v276_v27 = vld [vmem:[%s3593_s1 + $0x8] sm:$0xff]  ;;  %v627_v15 = vlaneseq }
  0x2c   :  { %2363 = vmatprep.subr.bf16.mxu0 %v2362_v16  ;;  %v278_v28 = vld [vmem:[%s3593_s1 + $0x18] sm:$0xff]  ;;  %v3144_v30 = vld [vmem:[%s3599_s7 + $0x20] sm:$0xff]  ;;  %v2368_v31 = vpack.c.bf16 %v2220_v26, %v2218_v25  ;;  %v277_v34 = vld [vmem:[%s3593_s1 + $0x10] sm:$0xff] }
  0x2d   :  { %2349 = vmatpush3.bf16.msra.mxu1 %v2346_v7  ;;  %v3139_v29 = vld [vmem:[%s3599_s7 + $0x18] sm:$0xff]  ;;  %v2370_v32 = vpack.c.bf16 %v278_v28, %v276_v27  ;;  %v275_v33 = vld [vmem:[%s3593_s1] sm:$0xff]  ;;  %v280_v35 = vld [vmem:[%s3593_s1 + $0x28] sm:$0xff]  ;;  %v628_v16 = vshrl.u32 %v627_v15, 7 }
  0x2e   :  { %2351 = vmatprep.subr.bf16.mxu1 %v2342_v4  ;;  %v282_v36 = vld [vmem:[%s3593_s1 + $0x38] sm:$0xff]  ;;  %v3165_v37 = vld [vmem:[%s3599_s7 + $0x28] sm:$0xff]  ;;  %v3170_v38 = vld [vmem:[%s3599_s7 + $0x30] sm:$0xff]  ;;  %v2372_v39 = vpack.c.bf16 %v277_v34, %v275_v33 }
  0x2f   :  { %2365 = vmatpush1.bf16.msra.mxu0 %v2364_v23  ;;  %v2374_v40 = vpack.c.bf16 %v282_v36, %v280_v35  ;;  %v279_v41 = vld [vmem:[%s3593_s1 + $0x20] sm:$0xff]  ;;  %v281_v42 = vld [vmem:[%s3593_s1 + $0x30] sm:$0xff]  ;;  %v284_v43 = vld [vmem:[%s3593_s1 + $0x48] sm:$0xff]  ;;  %v3266_v17 = vsub.s32 1, %v628_v16  ;;  %v3271_v19 = vsub.s32 0, %v628_v16 }
  0x30   :  { %2323 = vmatmul.mubr.msk.f32.vlgmr.msra.gmra.mrb[0].mxu1 %vm80_vm0, %v3113_v21  ;;  %2367 = vmatprep.subr.bf16.mxu0 %v2366_v24  ;;  %v286_v44 = vld [vmem:[%s3593_s1 + $0x58] sm:$0xff]  ;;  %v2376_v46 = vpack.c.bf16 %v281_v42, %v279_v41  ;;  %v283_v48 = vld [vmem:[%s3593_s1 + $0x40] sm:$0xff]  ;;  %v285_v49 = vld [vmem:[%s3593_s1 + $0x50] sm:$0xff] }
  0x31   :  { %2325 = vmatprep.mubr.msk.f32.mxu1 %vm80_vm0, %v3118_v22  ;;  %2353 = vmatpush3.bf16.msra.mxu1 %v2342_v4  ;;  %v3191_v45 = vld [vmem:[%s3599_s7 + $0x38] sm:$0xff]  ;;  %v2378_v47 = vpack.c.bf16 %v286_v44, %v284_v43  ;;  %v2380_v50 = vpack.c.bf16 %v285_v49, %v283_v48  ;;  %v2231_v51 = vld [vmem:[%s3593_s1 + $0xc8] sm:$0xff]  ;;  %v2230_v54 = vld [vmem:[%s3593_s1 + $0xc0] sm:$0xff] }
  0x32   :  { %2355 = vmatprep.subr.bf16.mxu1 %v2346_v7  ;;  %v2233_v52 = vld [vmem:[%s3593_s1 + $0xd8] sm:$0xff]  ;;  %v2232_v55 = vld [vmem:[%s3593_s1 + $0xd0] sm:$0xff]  ;;  %v2235_v56 = vld [vmem:[%s3593_s1 + $0xe8] sm:$0xff] }
  0x33   :  { %2369 = vmatpush1.bf16.msra.mxu0 %v2368_v31  ;;  %v2382_v53 = vpack.c.bf16 %v2233_v52, %v2231_v51  ;;  %v2237_v57 = vld [vmem:[%s3593_s1 + $0xf8] sm:$0xff]  ;;  %v2384_v58 = vpack.c.bf16 %v2232_v55, %v2230_v54  ;;  %v2234_v61 = vld [vmem:[%s3593_s1 + $0xe0] sm:$0xff]  ;;  %v2236_v62 = vld [vmem:[%s3593_s1 + $0xf0] sm:$0xff] }
  0x34   :  { %2326 = vmatmul.mubr.msk.f32.gmra.mrb[2].mxu1 %vm80_vm0, %v3139_v29  ;;  %2371 = vmatprep.subr.bf16.mxu0 %v2370_v32  ;;  %v2386_v60 = vpack.c.bf16 %v2237_v57, %v2235_v56  ;;  %v2240_v8 = vld [vmem:[%s3593_s1 + $0x110] sm:$0xff]  ;;  %v625_v18 = vld [vmem:[%s3594_s2] sm:$0x3]  ;;  %v897_v57 = vld [vmem:[#allocation3 + $0x208] sm:$0xff] }
  0x35   :  { %2357 = vmatpush3.bf16.msra.mxu1 %v2346_v7  ;;  %2336 = vmatprep.mubr.msk.f32.mxu1 %vm80_vm0, %v3144_v30  ;;  %v2238_v7 = vld [vmem:[%s3593_s1 + $0x100] sm:$0xff]  ;;  %v634_v23 = vrot.slane %v625_v18, %v3266_v17  ;;  %v630_v24 = vrot.slane %v625_v18, %v3271_v19  ;;  %v914_v18 = vld [vmem:[#allocation3 + $0x290] sm:$0xff] }
  0x36   :  { %2222 = vmatmul.mubr.msk.f32.vlgmr.msra.gmra.mrb[0].mxu0 %vm300_vm1, %v3052_v1  ;;  %v2239_v1 = vld [vmem:[%s3593_s1 + $0x108] sm:$0xff]  ;;  %v2392_v10 = vpack.c.bf16 %v2240_v8, %v2238_v7  ;;  %v904_v7 = vld [vmem:[#allocation3 + $0x240] sm:$0xff]  ;;  %v906_v8 = vld [vmem:[#allocation3 + $0x250] sm:$0xff] }
  0x37   :  { %383 = vmatprep.mubr.f32.mxu0 %v2963_v0  ;;  %2373 = vmatpush1.bf16.msra.mxu0 %v2372_v39 }
  0x38   :  { %2337 = vmatmul.mubr.msk.f32.vlgmr.msra.gmra.mrb[4].mxu1 %vm80_vm0, %v3165_v37  ;;  %2375 = vmatprep.subr.bf16.mxu0 %v2374_v40 }
  0x39   :  { %2339 = vmatprep.mubr.msk.f32.mxu1 %vm80_vm0, %v3170_v38 }
  0x3a   :  { %2223 = vmatmul.mubr.msk.f32.gmra.mrb[2].mxu0 %vm300_vm1, %v3057_v2  ;;  %v2241_v2 = vld [vmem:[%s3593_s1 + $0x118] sm:$0xff] }
  0x3b   :  { %389 = vmatprep.mubr.f32.mxu0 %v2963_v0  ;;  %2377 = vmatpush1.bf16.msra.mxu0 %v2376_v46 }
  0x3c   :  { %2340 = vmatmul.mubr.msk.f32.gmra.mrb[6].mxu1 %vm80_vm0, %v3191_v45  ;;  %2379 = vmatprep.subr.bf16.mxu0 %v2378_v47 }
  0x3d   :  { %717 = vmatprep.mubr.f32.mxu1 %v2963_v0 }
  0x3e   :  { %2224 = vmatmul.mubr.msk.f32.gmra.mrb[4].mxu0 %vm300_vm1, %v3062_v3  ;;  %v2388_v3 = vpack.c.bf16 %v2236_v62, %v2234_v61  ;;  %v898_v61 = vld [vmem:[#allocation3 + $0x210] sm:$0xff]  ;;  %v903_v62 = vld [vmem:[#allocation3 + $0x238] sm:$0xff] }
  0x3f   :  { %395 = vmatprep.mubr.f32.mxu0 %v2963_v0  ;;  %2381 = vmatpush1.bf16.msra.mxu0 %v2380_v50 }
  0x40   :  { %2383 = vmatprep.subr.bf16.mxu0 %v2382_v53 }
  0x42   :  { %2225 = vmatmul.mubr.msk.f32.gmra.mrb[6].mxu0 %vm300_vm1, %v3069_v5  ;;  %v2390_v5 = vpack.c.bf16 %v2241_v2, %v2239_v1  ;;  %v900_v1 = vld [vmem:[#allocation3 + $0x220] sm:$0xff]  ;;  %v902_v2 = vld [vmem:[#allocation3 + $0x230] sm:$0xff] }
  0x43   :  { %478 = vmatprep.mubr.f32.mxu0 %v2963_v0 }
 0x103   :  { %v2324_v59 = vpop.f32.mrb[0].mxu1 }
 0x104   :  { %v159_v63 = vpop.f32.mrb[1].mxu1 }
 0x105   :  { %2226 = vmatmul.mubr.msk.f32.vlgmr.msra.gmra.mrb[0].mxu0 %vm300_vm1, %v159_v63 }
 0x106   :  { %484 = vmatprep.mubr.f32.mxu0 %v2963_v0  ;;  %2385 = vmatpush1.bf16.msra.mxu0 %v2384_v58  ;;  %v899_v58 = vld [vmem:[#allocation3 + $0x218] sm:$0xff] }
 0x107   :  { %v2327_v4 = vpop.f32.mrb[2].mxu1  ;;  %2387 = vmatprep.subr.bf16.mxu0 %v2386_v60  ;;  %v896_v60 = vld [vmem:[#allocation3 + $0x200] sm:$0xff] }
 0x108   :  { %v169_v9 = vpop.f32.mrb[3].mxu1  ;;  %v2412_v63 = vpack.c.bf16 %v898_v61, %v896_v60  ;;  %v932_v61 = vld [vmem:[#allocation3 + $0x320] sm:$0xff] }
 0x109   :  { %2227 = vmatmul.mubr.msk.f32.gmra.mrb[2].mxu0 %vm300_vm1, %v2324_v59  ;;  %v2410_v59 = vpack.c.bf16 %v899_v58, %v897_v57  ;;  %v933_v57 = vld [vmem:[#allocation3 + $0x328] sm:$0xff]  ;;  %v935_v58 = vld [vmem:[#allocation3 + $0x338] sm:$0xff] }
 0x10a   :  { %490 = vmatprep.mubr.f32.mxu0 %v2963_v0  ;;  %2389 = vmatpush1.bf16.msra.mxu0 %v2388_v3  ;;  %v905_v3 = vld [vmem:[#allocation3 + $0x248] sm:$0xff]  ;;  %v2446_v60 = vpack.c.bf16 %v935_v58, %v933_v57  ;;  %v837_v57 = vld [vmem:[#allocation3 + $0x30] sm:$0xff] }
 0x10b   :  { %2391 = vmatprep.subr.bf16.mxu0 %v2390_v5  ;;  %v2338_v11 = vpop.f32.mrb[4].mxu1  ;;  %v840_v58 = vld [vmem:[#allocation3 + $0x48] sm:$0xff] }
 0x10c   :  { %v256_v12 = vpop.f32.mrb[5].mxu1 }
 0x10d   :  { %2228 = vmatmul.mubr.msk.f32.gmra.mrb[4].mxu0 %vm300_vm1, %v169_v9  ;;  %v911_v9 = vld [vmem:[#allocation3 + $0x278] sm:$0xff] }
 0x10e   :  { %496 = vmatprep.mubr.f32.mxu0 %v2963_v0  ;;  %2393 = vmatpush1.bf16.msra.mxu0 %v2392_v10  ;;  %v2420_v10 = vpack.c.bf16 %v906_v8, %v904_v7  ;;  %v940_v8 = vld [vmem:[#allocation3 + $0x360] sm:$0xff] }
 0x10f   :  { %v2341_v13 = vpop.f32.mrb[6].mxu1 }
 0x110   :  { %v266_v14 = vpop.f32.mrb[7].mxu1 }
 0x111   :  { %2229 = vmatmul.mubr.msk.f32.gmra.mrb[6].mxu0 %vm300_vm1, %v2327_v4  ;;  %v907_v4 = vld [vmem:[#allocation3 + $0x258] sm:$0xff] }
 0x112   :  { %592 = vmatprep.mubr.f32.mxu0 %v2963_v0  ;;  %v2418_v5 = vpack.c.bf16 %v907_v4, %v905_v3  ;;  %v938_v3 = vld [vmem:[#allocation3 + $0x350] sm:$0xff]  ;;  %v941_v4 = vld [vmem:[#allocation3 + $0x368] sm:$0xff] }
 0x115   :  { %2242 = vmatmul.mubr.msk.f32.vlgmr.msra.gmra.mrb[0].mxu0 %vm300_vm1, %v256_v12  ;;  %v910_v12 = vld [vmem:[#allocation3 + $0x270] sm:$0xff] }
 0x116   :  { %598 = vmatprep.mubr.f32.mxu0 %v2963_v0 }
 0x119   :  { %2243 = vmatmul.mubr.msk.f32.gmra.mrb[2].mxu0 %vm300_vm1, %v2338_v11 }
 0x11a   :  { %604 = vmatprep.mubr.f32.mxu0 %v2963_v0 }
 0x11d   :  { %2244 = vmatmul.mubr.msk.f32.gmra.mrb[4].mxu0 %vm300_vm1, %v266_v14  ;;  %v915_v14 = vld [vmem:[#allocation3 + $0x298] sm:$0xff] }
 0x11e   :  { %610 = vmatprep.mubr.f32.mxu0 %v2963_v0 }
 0x121   :  { %2245 = vmatmul.mubr.msk.f32.gmra.mrb[6].mxu0 %vm300_vm1, %v2341_v13  ;;  %v913_v13 = vld [vmem:[#allocation3 + $0x288] sm:$0xff] }
 0x122   :  { %1392 = vmatprep.mubr.f32.mxu0 %v2963_v0  ;;  %v2426_v16 = vpack.c.bf16 %v915_v14, %v913_v13  ;;  %v946_v13 = vld [vmem:[#allocation3 + $0x390] sm:$0xff]  ;;  %v949_v14 = vld [vmem:[#allocation3 + $0x3a8] sm:$0xff] }
 0x1e8   :  { %v594_v20 = vpop.f32.mrb[0].mxu0 }
 0x1e9   :  { %v596_v25 = vpop.f32.mrb[1].mxu0  ;;  %v637_v28 = vadd.f32 %v630_v24, %v594_v20  ;;  %v917_v20 = vld [vmem:[#allocation3 + $0x2a8] sm:$0xff] }
 0x1ea   :  { %v638_v26 = vadd.f32 %v634_v23, %v596_v25 }
 0x1eb   :  { %v3281_v40 = vmax.f32 %v637_v28, 0.0  ;;  %v923_v28 = vld [vmem:[#allocation3 + $0x2d8] sm:$0xff] }
 0x1ec   :  { %v600_v27 = vpop.f32.mrb[2].mxu0  ;;  %v3277_v35 = vmax.f32 %v638_v26, 0.0  ;;  %v918_v26 = vld [vmem:[#allocation3 + $0x2b0] sm:$0xff] }
 0x1ed   :  { %v639_v31 = vadd.f32 %v630_v24, %v600_v27  ;;  %v602_v32 = vpop.f32.mrb[3].mxu0  ;;  %v921_v27 = vld [vmem:[#allocation3 + $0x2c8] sm:$0xff] }
 0x1ee   :  { %v640_v33 = vadd.f32 %v634_v23, %v602_v32  ;;  %v2434_v32 = vpack.c.bf16 %v923_v28, %v921_v27  ;;  %v954_v27 = vld [vmem:[#allocation3 + $0x3d0] sm:$0xff]  ;;  %v957_v28 = vld [vmem:[#allocation3 + $0x3e8] sm:$0xff] }
 0x1ef   :  { %v3275_v34 = vmax.f32 %v639_v31, 0.0 }
 0x1f0   :  { %v3279_v36 = vmax.f32 %v640_v33, 0.0  ;;  %v606_v39 = vpop.f32.mrb[4].mxu0  ;;  %v920_v33 = vld [vmem:[#allocation3 + $0x2c0] sm:$0xff] }
 0x1f1   :  { %v608_v41 = vpop.f32.mrb[5].mxu0  ;;  %v2396_v43 = vpack.c.bf16 %v3275_v34, %v3281_v40  ;;  %v641_v47 = vadd.f32 %v630_v24, %v606_v39  ;;  %v922_v39 = vld [vmem:[#allocation3 + $0x2d0] sm:$0xff] }
 0x1f2   :  { %v2394_v42 = vpack.c.bf16 %v3279_v36, %v3277_v35  ;;  %v642_v44 = vadd.f32 %v634_v23, %v608_v41  ;;  %v925_v41 = vld [vmem:[#allocation3 + $0x2e8] sm:$0xff] }
 0x1f3   :  { %v3293_v54 = vmax.f32 %v641_v47, 0.0  ;;  %v929_v47 = vld [vmem:[#allocation3 + $0x308] sm:$0xff] }
 0x1f4   :  { %v612_v46 = vpop.f32.mrb[6].mxu0  ;;  %2395 = vmatprep.subr.bf16.mxu1 %v2394_v42  ;;  %v3289_v52 = vmax.f32 %v642_v44, 0.0  ;;  %v924_v44 = vld [vmem:[#allocation3 + $0x2e0] sm:$0xff] }
 0x1f5   :  { %v643_v48 = vadd.f32 %v630_v24, %v612_v46  ;;  %v614_v49 = vpop.f32.mrb[7].mxu0  ;;  %2397 = vmatpush1.bf16.msra.mxu1 %v2396_v43  ;;  %v926_v46 = vld [vmem:[#allocation3 + $0x2f0] sm:$0xff] }
 0x1f6   :  { %v644_v50 = vadd.f32 %v634_v23, %v614_v49  ;;  %v919_v23 = vld [vmem:[#allocation3 + $0x2b8] sm:$0xff]  ;;  %v2440_v49 = vpack.c.bf16 %v926_v46, %v924_v44  ;;  %v831_v46 = vld [vmem:[#allocation3] sm:$0xff] }
 0x1f7   :  { %v3287_v51 = vmax.f32 %v643_v48, 0.0  ;;  %v2430_v25 = vpack.c.bf16 %v919_v23, %v917_v20  ;;  %v931_v48 = vld [vmem:[#allocation3 + $0x318] sm:$0xff]  ;;  %v950_v20 = vld [vmem:[#allocation3 + $0x3b0] sm:$0xff]  ;;  %v953_v23 = vld [vmem:[#allocation3 + $0x3c8] sm:$0xff] }
 0x1f8   :  { %v3291_v53 = vmax.f32 %v644_v50, 0.0  ;;  %v2442_v50 = vpack.c.bf16 %v931_v48, %v929_v47  ;;  %v833_v47 = vld [vmem:[#allocation3 + $0x10] sm:$0xff]  ;;  %v836_v48 = vld [vmem:[#allocation3 + $0x28] sm:$0xff] }
 0x1f9   :  { %v2400_v56 = vpack.c.bf16 %v3287_v51, %v3293_v54 }
 0x1fa   :  { %v2398_v55 = vpack.c.bf16 %v3291_v53, %v3289_v52 }
 0x1fc   :  { %2399 = vmatprep.subr.bf16.mxu1 %v2398_v55 }
 0x1fd   :  { %2401 = vmatpush1.bf16.msra.mxu1 %v2400_v56 }
 0x1fe   :  { %2403 = vmatprep.subr.bf16.mxu1 %v2394_v42  ;;  %v927_v42 = vld [vmem:[#allocation3 + $0x2f8] sm:$0xff] }
 0x200   :  { %2246 = vmatmul.mubr.msk.f32.vlgmr.msra.gmra.mrb[8].mxu1 %vm80_vm0, %v3074_v6  ;;  %v901_v6 = vld [vmem:[#allocation3 + $0x228] sm:$0xff] }
 0x201   :  { %2405 = vmatpush1.bf16.msra.mxu1 %v2396_v43  ;;  %723 = vmatprep.mubr.f32.mxu1 %v2963_v0  ;;  %v2438_v43 = vpack.c.bf16 %v927_v42, %v925_v41  ;;  %v958_v41 = vld [vmem:[#allocation3 + $0x3f0] sm:$0xff]  ;;  %v832_v42 = vld [vmem:[#allocation3 + $0x8] sm:$0xff] }
 0x202   :  { %2407 = vmatprep.subr.bf16.mxu1 %v2398_v55  ;;  %v928_v55 = vld [vmem:[#allocation3 + $0x300] sm:$0xff] }
 0x204   :  { %2247 = vmatmul.mubr.msk.f32.gmra.mrb[10].mxu1 %vm80_vm0, %v3113_v21  ;;  %v2414_v21 = vpack.c.bf16 %v903_v62, %v901_v6  ;;  %v934_v6 = vld [vmem:[#allocation3 + $0x330] sm:$0xff]  ;;  %v937_v62 = vld [vmem:[#allocation3 + $0x348] sm:$0xff] }
 0x205   :  { %2409 = vmatpush1.bf16.msra.mxu1 %v2400_v56  ;;  %729 = vmatprep.mubr.f32.mxu1 %v2963_v0  ;;  %v930_v56 = vld [vmem:[#allocation3 + $0x310] sm:$0xff] }
 0x206   :  { %2411 = vmatprep.subr.bf16.mxu1 %v2410_v59  ;;  %v2444_v59 = vpack.c.bf16 %v930_v56, %v928_v55  ;;  %v835_v56 = vld [vmem:[#allocation3 + $0x20] sm:$0xff] }
 0x208   :  { %2248 = vmatmul.mubr.msk.f32.gmra.mrb[12].mxu1 %vm80_vm0, %v3118_v22  ;;  %v2416_v22 = vpack.c.bf16 %v902_v2, %v900_v1  ;;  %v936_v2 = vld [vmem:[#allocation3 + $0x340] sm:$0xff] }
 0x209   :  { %735 = vmatprep.mubr.f32.mxu1 %v2963_v0 }
 0x20c   :  { %2249 = vmatmul.mubr.msk.f32.gmra.mrb[14].mxu1 %vm80_vm0, %v3139_v29  ;;  %v909_v29 = vld [vmem:[#allocation3 + $0x268] sm:$0xff] }
 0x20d   :  { %806 = vmatprep.mubr.f32.mxu1 %v2963_v0  ;;  %v2422_v11 = vpack.c.bf16 %v911_v9, %v909_v29  ;;  %v942_v29 = vld [vmem:[#allocation3 + $0x370] sm:$0xff]  ;;  %v945_v9 = vld [vmem:[#allocation3 + $0x388] sm:$0xff] }
 0x210   :  { %2250 = vmatmul.mubr.msk.f32.vlgmr.msra.gmra.mrb[16].mxu1 %vm80_vm0, %v3144_v30  ;;  %v908_v30 = vld [vmem:[#allocation3 + $0x260] sm:$0xff] }
 0x211   :  { %2413 = vmatpush1.bf16.msra.mxu1 %v2412_v63  ;;  %812 = vmatprep.mubr.f32.mxu1 %v2963_v0  ;;  %v2424_v15 = vpack.c.bf16 %v910_v12, %v908_v30  ;;  %v939_v63 = vld [vmem:[#allocation3 + $0x358] sm:$0xff]  ;;  %v944_v12 = vld [vmem:[#allocation3 + $0x380] sm:$0xff] }
 0x212   :  { %2415 = vmatprep.subr.bf16.mxu1 %v2414_v21  ;;  %v2448_v21 = vpack.c.bf16 %v934_v6, %v932_v61  ;;  %v2450_v1 = vpack.c.bf16 %v939_v63, %v937_v62  ;;  %v839_v6 = vld [vmem:[#allocation3 + $0x40] sm:$0xff]  ;;  %v841_v62 = vld [vmem:[#allocation3 + $0x50] sm:$0xff]  ;;  %v844_v63 = vld [vmem:[#allocation3 + $0x68] sm:$0xff] }
 0x214   :  { %2251 = vmatmul.mubr.msk.f32.gmra.mrb[18].mxu1 %vm80_vm0, %v3165_v37  ;;  %v912_v37 = vld [vmem:[#allocation3 + $0x280] sm:$0xff] }
 0x215   :  { %2417 = vmatpush1.bf16.msra.mxu1 %v2416_v22  ;;  %818 = vmatprep.mubr.f32.mxu1 %v2963_v0  ;;  %v2428_v24 = vpack.c.bf16 %v914_v18, %v912_v37  ;;  %v943_v22 = vld [vmem:[#allocation3 + $0x378] sm:$0xff]  ;;  %v948_v18 = vld [vmem:[#allocation3 + $0x3a0] sm:$0xff] }
 0x216   :  { %2419 = vmatprep.subr.bf16.mxu1 %v2418_v5  ;;  %v2452_v5 = vpack.c.bf16 %v938_v3, %v936_v2  ;;  %v2454_v7 = vpack.c.bf16 %v943_v22, %v941_v4  ;;  %v843_v3 = vld [vmem:[#allocation3 + $0x60] sm:$0xff]  ;;  %v845_v4 = vld [vmem:[#allocation3 + $0x70] sm:$0xff]  ;;  %v848_v22 = vld [vmem:[#allocation3 + $0x88] sm:$0xff] }
 0x218   :  { %2252 = vmatmul.mubr.msk.f32.gmra.mrb[20].mxu1 %vm80_vm0, %v3170_v38  ;;  %v916_v38 = vld [vmem:[#allocation3 + $0x2a0] sm:$0xff] }
 0x219   :  { %2421 = vmatpush1.bf16.msra.mxu1 %v2420_v10  ;;  %824 = vmatprep.mubr.f32.mxu1 %v2963_v0  ;;  %v2432_v31 = vpack.c.bf16 %v918_v26, %v916_v38  ;;  %v947_v10 = vld [vmem:[#allocation3 + $0x398] sm:$0xff]  ;;  %v952_v26 = vld [vmem:[#allocation3 + $0x3c0] sm:$0xff] }
 0x21a   :  { %2423 = vmatprep.subr.bf16.mxu1 %v2422_v11  ;;  %v2456_v11 = vpack.c.bf16 %v942_v29, %v940_v8  ;;  %v2458_v30 = vpack.c.bf16 %v947_v10, %v945_v9  ;;  %v847_v29 = vld [vmem:[#allocation3 + $0x80] sm:$0xff]  ;;  %v849_v9 = vld [vmem:[#allocation3 + $0x90] sm:$0xff]  ;;  %v852_v10 = vld [vmem:[#allocation3 + $0xa8] sm:$0xff] }
 0x21c   :  { %2253 = vmatmul.mubr.msk.f32.gmra.mrb[22].mxu1 %vm80_vm0, %v3191_v45  ;;  %v2436_v45 = vpack.c.bf16 %v922_v39, %v920_v33  ;;  %v956_v39 = vld [vmem:[#allocation3 + $0x3e0] sm:$0xff] }
 0x21d   :  { %2425 = vmatpush1.bf16.msra.mxu1 %v2424_v15  ;;  %1024 = vmatprep.mubr.f32.mxu1 %v3277_v35  ;;  %v951_v15 = vld [vmem:[#allocation3 + $0x3b8] sm:$0xff] }
 0x21e   :  { %2427 = vmatprep.subr.bf16.mxu1 %v2426_v16  ;;  %v2460_v16 = vpack.c.bf16 %v946_v13, %v944_v12  ;;  %v2462_v37 = vpack.c.bf16 %v951_v15, %v949_v14  ;;  %v851_v13 = vld [vmem:[#allocation3 + $0xa0] sm:$0xff]  ;;  %v853_v14 = vld [vmem:[#allocation3 + $0xb0] sm:$0xff]  ;;  %v856_v15 = vld [vmem:[#allocation3 + $0xc8] sm:$0xff] }
 0x221   :  { %2429 = vmatpush1.bf16.msra.mxu1 %v2428_v24  ;;  %v955_v24 = vld [vmem:[#allocation3 + $0x3d8] sm:$0xff] }
 0x222   :  { %2431 = vmatprep.subr.bf16.mxu1 %v2430_v25  ;;  %v2464_v25 = vpack.c.bf16 %v950_v20, %v948_v18  ;;  %v2466_v38 = vpack.c.bf16 %v955_v24, %v953_v23  ;;  %v855_v20 = vld [vmem:[#allocation3 + $0xc0] sm:$0xff]  ;;  %v857_v23 = vld [vmem:[#allocation3 + $0xd0] sm:$0xff]  ;;  %v860_v24 = vld [vmem:[#allocation3 + $0xe8] sm:$0xff] }
 0x225   :  { %2433 = vmatpush1.bf16.msra.mxu1 %v2432_v31  ;;  %v959_v31 = vld [vmem:[#allocation3 + $0x3f8] sm:$0xff] }
 0x226   :  { %2435 = vmatprep.subr.bf16.mxu1 %v2434_v32  ;;  %v2468_v32 = vpack.c.bf16 %v954_v27, %v952_v26  ;;  %v2470_v33 = vpack.c.bf16 %v959_v31, %v957_v28  ;;  %v859_v27 = vld [vmem:[#allocation3 + $0xe0] sm:$0xff]  ;;  %v861_v28 = vld [vmem:[#allocation3 + $0xf0] sm:$0xff]  ;;  %v864_v31 = vld [vmem:[#allocation3 + $0x108] sm:$0xff] }
 0x229   :  { %2437 = vmatpush1.bf16.msra.mxu1 %v2436_v45  ;;  %v834_v45 = vld [vmem:[#allocation3 + $0x18] sm:$0xff] }
 0x22a   :  { %2439 = vmatprep.subr.bf16.mxu1 %v2438_v43  ;;  %v2472_v43 = vpack.c.bf16 %v958_v41, %v956_v39  ;;  %v2474_v44 = vpack.c.bf16 %v834_v45, %v832_v42  ;;  %v863_v41 = vld [vmem:[#allocation3 + $0x100] sm:$0xff]  ;;  %v865_v42 = vld [vmem:[#allocation3 + $0x110] sm:$0xff]  ;;  %v868_v45 = vld [vmem:[#allocation3 + $0x128] sm:$0xff] }
 0x22d   :  { %2441 = vmatpush1.bf16.msra.mxu1 %v2440_v49  ;;  %v838_v49 = vld [vmem:[#allocation3 + $0x38] sm:$0xff] }
 0x22e   :  { %2443 = vmatprep.subr.bf16.mxu1 %v2442_v50  ;;  %v2476_v50 = vpack.c.bf16 %v833_v47, %v831_v46  ;;  %v2478_v55 = vpack.c.bf16 %v838_v49, %v836_v48  ;;  %v867_v47 = vld [vmem:[#allocation3 + $0x120] sm:$0xff]  ;;  %v869_v48 = vld [vmem:[#allocation3 + $0x130] sm:$0xff]  ;;  %v872_v49 = vld [vmem:[#allocation3 + $0x148] sm:$0xff] }
 0x231   :  { %2445 = vmatpush1.bf16.msra.mxu1 %v2444_v59  ;;  %v842_v59 = vld [vmem:[#allocation3 + $0x58] sm:$0xff] }
 0x232   :  { %2447 = vmatprep.subr.bf16.mxu1 %v2446_v60  ;;  %v2480_v60 = vpack.c.bf16 %v837_v57, %v835_v56  ;;  %v2482_v61 = vpack.c.bf16 %v842_v59, %v840_v58  ;;  %v871_v57 = vld [vmem:[#allocation3 + $0x140] sm:$0xff]  ;;  %v873_v58 = vld [vmem:[#allocation3 + $0x150] sm:$0xff]  ;;  %v876_v59 = vld [vmem:[#allocation3 + $0x168] sm:$0xff] }
 0x235   :  { %2449 = vmatpush1.bf16.msra.mxu1 %v2448_v21  ;;  %v846_v21 = vld [vmem:[#allocation3 + $0x78] sm:$0xff] }
 0x236   :  { %2451 = vmatprep.subr.bf16.mxu1 %v2450_v1  ;;  %v2484_v1 = vpack.c.bf16 %v841_v62, %v839_v6  ;;  %v2486_v2 = vpack.c.bf16 %v846_v21, %v844_v63  ;;  %v875_v62 = vld [vmem:[#allocation3 + $0x160] sm:$0xff]  ;;  %v877_v63 = vld [vmem:[#allocation3 + $0x170] sm:$0xff]  ;;  %v880_v21 = vld [vmem:[#allocation3 + $0x188] sm:$0xff] }
 0x239   :  { %2453 = vmatpush1.bf16.msra.mxu1 %v2452_v5  ;;  %v850_v5 = vld [vmem:[#allocation3 + $0x98] sm:$0xff] }
 0x23a   :  { %2455 = vmatprep.subr.bf16.mxu1 %v2454_v7  ;;  %v2488_v7 = vpack.c.bf16 %v845_v4, %v843_v3  ;;  %v2490_v8 = vpack.c.bf16 %v850_v5, %v848_v22  ;;  %v879_v4 = vld [vmem:[#allocation3 + $0x180] sm:$0xff]  ;;  %v881_v22 = vld [vmem:[#allocation3 + $0x190] sm:$0xff]  ;;  %v884_v5 = vld [vmem:[#allocation3 + $0x1a8] sm:$0xff] }
 0x23d   :  { %2457 = vmatpush1.bf16.msra.mxu1 %v2456_v11  ;;  %v854_v11 = vld [vmem:[#allocation3 + $0xb8] sm:$0xff] }
 0x23e   :  { %2459 = vmatprep.subr.bf16.mxu1 %v2458_v30  ;;  %v2492_v30 = vpack.c.bf16 %v849_v9, %v847_v29  ;;  %v2494_v12 = vpack.c.bf16 %v854_v11, %v852_v10  ;;  %v883_v9 = vld [vmem:[#allocation3 + $0x1a0] sm:$0xff]  ;;  %v885_v10 = vld [vmem:[#allocation3 + $0x1b0] sm:$0xff]  ;;  %v888_v11 = vld [vmem:[#allocation3 + $0x1c8] sm:$0xff] }
 0x241   :  { %2461 = vmatpush1.bf16.msra.mxu1 %v2460_v16  ;;  %v858_v16 = vld [vmem:[#allocation3 + $0xd8] sm:$0xff] }
 0x242   :  { %2463 = vmatprep.subr.bf16.mxu1 %v2462_v37  ;;  %v2496_v37 = vpack.c.bf16 %v853_v14, %v851_v13  ;;  %v2498_v18 = vpack.c.bf16 %v858_v16, %v856_v15  ;;  %v887_v14 = vld [vmem:[#allocation3 + $0x1c0] sm:$0xff]  ;;  %v889_v15 = vld [vmem:[#allocation3 + $0x1d0] sm:$0xff]  ;;  %v892_v16 = vld [vmem:[#allocation3 + $0x1e8] sm:$0xff] }
 0x245   :  { %2465 = vmatpush1.bf16.msra.mxu1 %v2464_v25  ;;  %v862_v25 = vld [vmem:[#allocation3 + $0xf8] sm:$0xff] }
 0x246   :  { %2467 = vmatprep.subr.bf16.mxu1 %v2466_v38  ;;  %v2500_v38 = vpack.c.bf16 %v857_v23, %v855_v20  ;;  %v2502_v26 = vpack.c.bf16 %v862_v25, %v860_v24  ;;  %v891_v23 = vld [vmem:[#allocation3 + $0x1e0] sm:$0xff]  ;;  %v893_v24 = vld [vmem:[#allocation3 + $0x1f0] sm:$0xff]  ;;  %v1140_v25 = vld [vmem:[#allocation3 + $0x408] sm:$0xff] }
 0x249   :  { %2469 = vmatpush1.bf16.msra.mxu1 %v2468_v32  ;;  %v866_v32 = vld [vmem:[#allocation3 + $0x118] sm:$0xff] }
 0x24a   :  { %2471 = vmatprep.subr.bf16.mxu1 %v2470_v33  ;;  %v2504_v33 = vpack.c.bf16 %v861_v28, %v859_v27  ;;  %v2506_v39 = vpack.c.bf16 %v866_v32, %v864_v31  ;;  %v1139_v28 = vld [vmem:[#allocation3 + $0x400] sm:$0xff]  ;;  %v1141_v31 = vld [vmem:[#allocation3 + $0x410] sm:$0xff]  ;;  %v1144_v32 = vld [vmem:[#allocation3 + $0x428] sm:$0xff] }
 0x24d   :  { %2473 = vmatpush1.bf16.msra.mxu1 %v2472_v43  ;;  %v870_v43 = vld [vmem:[#allocation3 + $0x138] sm:$0xff] }
 0x24e   :  { %2475 = vmatprep.subr.bf16.mxu1 %v2474_v44  ;;  %v2508_v44 = vpack.c.bf16 %v865_v42, %v863_v41  ;;  %v2510_v46 = vpack.c.bf16 %v870_v43, %v868_v45  ;;  %v2540_v41 = vpack.c.bf16 %v1141_v31, %v1139_v28  ;;  %v1143_v43 = vld [vmem:[#allocation3 + $0x420] sm:$0xff] }
 0x250   :  { %1025 = vmatmul.mubr.f32.vlgmr.msra.gmra.mrb[24].mxu1 %v3281_v40 }
 0x251   :  { %1030 = vmatprep.mubr.f32.mxu1 %v3279_v36  ;;  %2477 = vmatpush1.bf16.msra.mxu1 %v2476_v50  ;;  %v874_v50 = vld [vmem:[#allocation3 + $0x158] sm:$0xff] }
 0x252   :  { %2479 = vmatprep.subr.bf16.mxu1 %v2478_v55  ;;  %v2512_v55 = vpack.c.bf16 %v869_v48, %v867_v47  ;;  %v2514_v56 = vpack.c.bf16 %v874_v50, %v872_v49  ;;  %v1150_v47 = vld [vmem:[#allocation3 + $0x458] sm:$0xff] }
 0x254   :  { %1031 = vmatmul.mubr.f32.gmra.mrb[26].mxu1 %v3275_v34 }
 0x255   :  { %1036 = vmatprep.mubr.f32.mxu1 %v3289_v52  ;;  %2481 = vmatpush1.bf16.msra.mxu1 %v2480_v60  ;;  %v878_v60 = vld [vmem:[#allocation3 + $0x178] sm:$0xff] }
 0x256   :  { %2483 = vmatprep.subr.bf16.mxu1 %v2482_v61  ;;  %v2516_v61 = vpack.c.bf16 %v873_v58, %v871_v57  ;;  %v2518_v6 = vpack.c.bf16 %v878_v60, %v876_v59  ;;  %v1152_v58 = vld [vmem:[#allocation3 + $0x468] sm:$0xff]  ;;  %v1154_v59 = vld [vmem:[#allocation3 + $0x478] sm:$0xff] }
 0x258   :  { %1037 = vmatmul.mubr.f32.gmra.mrb[28].mxu1 %v3293_v54 }
 0x259   :  { %1042 = vmatprep.mubr.f32.mxu1 %v3291_v53  ;;  %2485 = vmatpush1.bf16.msra.mxu1 %v2484_v1  ;;  %v882_v1 = vld [vmem:[#allocation3 + $0x198] sm:$0xff] }
 0x25a   :  { %2487 = vmatprep.subr.bf16.mxu1 %v2486_v2  ;;  %v2520_v2 = vpack.c.bf16 %v877_v63, %v875_v62  ;;  %v2522_v3 = vpack.c.bf16 %v882_v1, %v880_v21  ;;  %v1151_v62 = vld [vmem:[#allocation3 + $0x460] sm:$0xff]  ;;  %v1153_v63 = vld [vmem:[#allocation3 + $0x470] sm:$0xff]  ;;  %v1156_v1 = vld [vmem:[#allocation3 + $0x488] sm:$0xff] }
 0x25c   :  { %1043 = vmatmul.mubr.f32.gmra.mrb[30].mxu1 %v3287_v51 }
 0x25d   :  { %2489 = vmatpush1.bf16.msra.mxu1 %v2488_v7  ;;  %v886_v7 = vld [vmem:[#allocation3 + $0x1b8] sm:$0xff] }
 0x25e   :  { %2491 = vmatprep.subr.bf16.mxu1 %v2490_v8  ;;  %v2524_v8 = vpack.c.bf16 %v881_v22, %v879_v4  ;;  %v2526_v29 = vpack.c.bf16 %v886_v7, %v884_v5  ;;  %v1155_v5 = vld [vmem:[#allocation3 + $0x480] sm:$0xff]  ;;  %v1157_v7 = vld [vmem:[#allocation3 + $0x490] sm:$0xff] }
 0x261   :  { %2493 = vmatpush1.bf16.msra.mxu1 %v2492_v30  ;;  %v890_v30 = vld [vmem:[#allocation3 + $0x1d8] sm:$0xff] }
 0x262   :  { %2495 = vmatprep.subr.bf16.mxu1 %v2494_v12  ;;  %v2528_v12 = vpack.c.bf16 %v885_v10, %v883_v9  ;;  %v2530_v13 = vpack.c.bf16 %v890_v30, %v888_v11  ;;  %v1162_v9 = vld [vmem:[#allocation3 + $0x4b8] sm:$0xff]  ;;  %v2556_v10 = vpack.c.bf16 %v1157_v7, %v1155_v5  ;;  %v1188_v5 = vld [vmem:[#allocation3 + $0x588] sm:$0xff] }
 0x263   :  { %v1190_v7 = vld [vmem:[#allocation3 + $0x598] sm:$0xff] }
 0x265   :  { %2497 = vmatpush1.bf16.msra.mxu1 %v2496_v37  ;;  %v894_v37 = vld [vmem:[#allocation3 + $0x1f8] sm:$0xff] }
 0x266   :  { %2499 = vmatprep.subr.bf16.mxu1 %v2498_v18  ;;  %v2532_v18 = vpack.c.bf16 %v889_v15, %v887_v14  ;;  %v2534_v20 = vpack.c.bf16 %v894_v37, %v892_v16  ;;  %v1164_v15 = vld [vmem:[#allocation3 + $0x4c8] sm:$0xff]  ;;  %v1166_v16 = vld [vmem:[#allocation3 + $0x4d8] sm:$0xff] }
 0x269   :  { %2501 = vmatpush1.bf16.msra.mxu1 %v2500_v38  ;;  %v1142_v38 = vld [vmem:[#allocation3 + $0x418] sm:$0xff] }
 0x26a   :  { %2503 = vmatprep.subr.bf16.mxu1 %v2502_v26  ;;  %v2536_v26 = vpack.c.bf16 %v893_v24, %v891_v23  ;;  %v2538_v27 = vpack.c.bf16 %v1142_v38, %v1140_v25  ;;  %v1163_v23 = vld [vmem:[#allocation3 + $0x4c0] sm:$0xff]  ;;  %v1165_v24 = vld [vmem:[#allocation3 + $0x4d0] sm:$0xff]  ;;  %v1168_v38 = vld [vmem:[#allocation3 + $0x4e8] sm:$0xff] }
 0x26d   :  { %2505 = vmatpush1.bf16.msra.mxu1 %v2504_v33  ;;  %v1146_v33 = vld [vmem:[#allocation3 + $0x438] sm:$0xff] }
 0x26e   :  { %2507 = vmatprep.subr.bf16.mxu1 %v2506_v39  ;;  %v2542_v45 = vpack.c.bf16 %v1146_v33, %v1144_v32  ;;  %v1167_v32 = vld [vmem:[#allocation3 + $0x4e0] sm:$0xff]  ;;  %v1169_v33 = vld [vmem:[#allocation3 + $0x4f0] sm:$0xff] }
 0x271   :  { %2509 = vmatpush1.bf16.msra.mxu1 %v2508_v44  ;;  %v1145_v44 = vld [vmem:[#allocation3 + $0x430] sm:$0xff] }
 0x272   :  { %2511 = vmatprep.subr.bf16.mxu1 %v2510_v46  ;;  %v1148_v46 = vld [vmem:[#allocation3 + $0x448] sm:$0xff]  ;;  %v2544_v48 = vpack.c.bf16 %v1145_v44, %v1143_v43 }
 0x273   :  { %v2546_v50 = vpack.c.bf16 %v1150_v47, %v1148_v46  ;;  %v1171_v46 = vld [vmem:[#allocation3 + $0x500] sm:$0xff]  ;;  %v1173_v47 = vld [vmem:[#allocation3 + $0x510] sm:$0xff] }
 0x275   :  { %2513 = vmatpush1.bf16.msra.mxu1 %v2512_v55  ;;  %v1147_v55 = vld [vmem:[#allocation3 + $0x440] sm:$0xff] }
 0x276   :  { %2515 = vmatprep.subr.bf16.mxu1 %v2514_v56  ;;  %v1149_v56 = vld [vmem:[#allocation3 + $0x450] sm:$0xff] }
 0x277   :  { %v2548_v60 = vpack.c.bf16 %v1149_v56, %v1147_v55  ;;  %v2572_v55 = vpack.c.bf16 %v1173_v47, %v1171_v46 }
 0x279   :  { %2517 = vmatpush1.bf16.msra.mxu1 %v2516_v61 }
 0x27a   :  { %2519 = vmatprep.subr.bf16.mxu1 %v2518_v6  ;;  %v2550_v6 = vpack.c.bf16 %v1154_v59, %v1152_v58  ;;  %v1177_v58 = vld [vmem:[#allocation3 + $0x530] sm:$0xff]  ;;  %v1180_v59 = vld [vmem:[#allocation3 + $0x548] sm:$0xff] }
 0x27d   :  { %2521 = vmatpush1.bf16.msra.mxu1 %v2520_v2  ;;  %v1158_v2 = vld [vmem:[#allocation3 + $0x498] sm:$0xff] }
 0x27e   :  { %2523 = vmatprep.subr.bf16.mxu1 %v2522_v3  ;;  %v2552_v3 = vpack.c.bf16 %v1153_v63, %v1151_v62  ;;  %v2554_v22 = vpack.c.bf16 %v1158_v2, %v1156_v1  ;;  %v1179_v62 = vld [vmem:[#allocation3 + $0x540] sm:$0xff]  ;;  %v1181_v63 = vld [vmem:[#allocation3 + $0x550] sm:$0xff]  ;;  %v1186_v1 = vld [vmem:[#allocation3 + $0x578] sm:$0xff] }
 0x27f   :  { %v2580_v2 = vpack.c.bf16 %v1181_v63, %v1179_v62 }
 0x281   :  { %2525 = vmatpush1.bf16.msra.mxu1 %v2524_v8 }
 0x282   :  { %2527 = vmatprep.subr.bf16.mxu1 %v2526_v29  ;;  %v1160_v29 = vld [vmem:[#allocation3 + $0x4a8] sm:$0xff] }
 0x283   :  { %v2558_v30 = vpack.c.bf16 %v1162_v9, %v1160_v29  ;;  %v2586_v29 = vpack.c.bf16 %v1190_v7, %v1188_v5  ;;  %v1187_v9 = vld [vmem:[#allocation3 + $0x580] sm:$0xff] }
 0x285   :  { %2529 = vmatpush1.bf16.msra.mxu1 %v2528_v12  ;;  %v1159_v12 = vld [vmem:[#allocation3 + $0x4a0] sm:$0xff] }
 0x286   :  { %2531 = vmatprep.subr.bf16.mxu1 %v2530_v13  ;;  %v1161_v13 = vld [vmem:[#allocation3 + $0x4b0] sm:$0xff] }
 0x287   :  { %v2560_v37 = vpack.c.bf16 %v1161_v13, %v1159_v12  ;;  %v1194_v12 = vld [vmem:[#allocation3 + $0x5b8] sm:$0xff] }
 0x289   :  { %2533 = vmatpush1.bf16.msra.mxu1 %v2532_v18 }
 0x28a   :  { %2535 = vmatprep.subr.bf16.mxu1 %v2534_v20  ;;  %v2562_v20 = vpack.c.bf16 %v1166_v16, %v1164_v15  ;;  %v1191_v15 = vld [vmem:[#allocation3 + $0x5a0] sm:$0xff]  ;;  %v1193_v16 = vld [vmem:[#allocation3 + $0x5b0] sm:$0xff] }
 0x28d   :  { %2537 = vmatpush1.bf16.msra.mxu1 %v2536_v26  ;;  %v1170_v26 = vld [vmem:[#allocation3 + $0x4f8] sm:$0xff] }
 0x28e   :  { %2539 = vmatprep.subr.bf16.mxu1 %v2538_v27  ;;  %v2564_v27 = vpack.c.bf16 %v1165_v24, %v1163_v23  ;;  %v2566_v31 = vpack.c.bf16 %v1170_v26, %v1168_v38  ;;  %v2592_v23 = vpack.c.bf16 %v1193_v16, %v1191_v15  ;;  %v1195_v38 = vld [vmem:[#allocation3 + $0x5c0] sm:$0xff]  ;;  %v1197_v26 = vld [vmem:[#allocation3 + $0x5d0] sm:$0xff]  ;;  %v1576_v16 = vld [vmem:[#allocation5 + $0x228] sm:$0xff] }
 0x28f   :  { %v1573_v15 = vld [vmem:[#allocation5 + $0x210] sm:$0xff] }
 0x2d3   :  { %v719_v39 = vpop.f32.mrb[8].mxu1 }
 0x2d4   :  { %v721_v42 = vpop.f32.mrb[9].mxu1 }
 0x2d5   :  { %1113 = vmatprep.mubr.f32.mxu1 %v721_v42  ;;  %v1174_v42 = vld [vmem:[#allocation3 + $0x518] sm:$0xff] }
 0x2d6   :  { %1114 = vmatmul.mubr.f32.vlgmr.msra.gmra.mrb[24].mxu1 %v719_v39 }
 0x2d7   :  { %2541 = vmatpush1.bf16.msra.mxu1 %v2540_v41  ;;  %v725_v49 = vpop.f32.mrb[10].mxu1  ;;  %v1172_v41 = vld [vmem:[#allocation3 + $0x508] sm:$0xff] }
 0x2d8   :  { %2543 = vmatprep.subr.bf16.mxu1 %v2542_v45  ;;  %v727_v57 = vpop.f32.mrb[11].mxu1  ;;  %v2568_v45 = vpack.c.bf16 %v1169_v33, %v1167_v32  ;;  %v2570_v44 = vpack.c.bf16 %v1174_v42, %v1172_v41  ;;  %v2596_v32 = vpack.c.bf16 %v1197_v26, %v1195_v38  ;;  %v1199_v41 = vld [vmem:[#allocation3 + $0x5e0] sm:$0xff]  ;;  %v1201_v42 = vld [vmem:[#allocation3 + $0x5f0] sm:$0xff] }
 0x2d9   :  { %1119 = vmatprep.mubr.f32.mxu1 %v727_v57  ;;  %v1175_v57 = vld [vmem:[#allocation3 + $0x520] sm:$0xff]  ;;  %v1577_v26 = vld [vmem:[#allocation5 + $0x230] sm:$0xff] }
 0x2da   :  { %1120 = vmatmul.mubr.f32.gmra.mrb[26].mxu1 %v725_v49  ;;  %v1176_v49 = vld [vmem:[#allocation3 + $0x528] sm:$0xff]  ;;  %v1575_v38 = vld [vmem:[#allocation5 + $0x220] sm:$0xff] }
 0x2db   :  { %2545 = vmatpush1.bf16.msra.mxu1 %v2544_v48  ;;  %v731_v61 = vpop.f32.mrb[12].mxu1 }
 0x2dc   :  { %2547 = vmatprep.subr.bf16.mxu1 %v2546_v50  ;;  %v733_v21 = vpop.f32.mrb[13].mxu1  ;;  %v1178_v50 = vld [vmem:[#allocation3 + $0x538] sm:$0xff] }
 0x2dd   :  { %1125 = vmatprep.mubr.f32.mxu1 %v733_v21  ;;  %v2574_v56 = vpack.c.bf16 %v1178_v50, %v1176_v49  ;;  %v1184_v21 = vld [vmem:[#allocation3 + $0x568] sm:$0xff] }
 0x2de   :  { %1126 = vmatmul.mubr.f32.gmra.mrb[28].mxu1 %v731_v61  ;;  %v2576_v61 = vpack.c.bf16 %v1177_v58, %v1175_v57 }
 0x2df   :  { %2549 = vmatpush1.bf16.msra.mxu1 %v2548_v60  ;;  %v737_v4 = vpop.f32.mrb[14].mxu1  ;;  %v1182_v60 = vld [vmem:[#allocation3 + $0x558] sm:$0xff] }
 0x2e0   :  { %2551 = vmatprep.subr.bf16.mxu1 %v2550_v6  ;;  %v739_v8 = vpop.f32.mrb[15].mxu1  ;;  %v2578_v6 = vpack.c.bf16 %v1182_v60, %v1180_v59 }
 0x2e1   :  { %1131 = vmatprep.mubr.f32.mxu1 %v739_v8 }
 0x2e2   :  { %1132 = vmatmul.mubr.f32.gmra.mrb[30].mxu1 %v737_v4  ;;  %v1183_v4 = vld [vmem:[#allocation3 + $0x560] sm:$0xff] }
 0x2e3   :  { %2553 = vmatpush1.bf16.msra.mxu1 %v2552_v3  ;;  %v3330_v11 = vpop.f32.mrb[16].mxu1  ;;  %v2582_v3 = vpack.c.bf16 %v1186_v1, %v1184_v21 }
 0x2e4   :  { %2555 = vmatprep.subr.bf16.mxu1 %v2554_v22  ;;  %v810_v14 = vpop.f32.mrb[17].mxu1  ;;  %v1185_v22 = vld [vmem:[#allocation3 + $0x570] sm:$0xff] }
 0x2e5   :  { %1267 = vmatprep.mubr.f32.mxu1 %v810_v14  ;;  %v2584_v8 = vpack.c.bf16 %v1185_v22, %v1183_v4 }
 0x2e7   :  { %2557 = vmatpush1.bf16.msra.mxu1 %v2556_v10  ;;  %v3332_v18 = vpop.f32.mrb[18].mxu1  ;;  %v1189_v10 = vld [vmem:[#allocation3 + $0x590] sm:$0xff] }
 0x2e8   :  { %2559 = vmatprep.subr.bf16.mxu1 %v2558_v30  ;;  %v3334_v25 = vpop.f32.mrb[19].mxu1  ;;  %v1192_v30 = vld [vmem:[#allocation3 + $0x5a8] sm:$0xff]  ;;  %v2588_v13 = vpack.c.bf16 %v1189_v10, %v1187_v9  ;;  %v1574_v9 = vld [vmem:[#allocation5 + $0x218] sm:$0xff]  ;;  %v2903_v10 = vld [vmem:[%s3599_s7] sm:$0xff] }
 0x2e9   :  { %v2590_v14 = vpack.c.bf16 %v1194_v12, %v1192_v30  ;;  %v2904_v12 = vld [vmem:[%s3599_s7 + $0x8] sm:$0xff] }
 0x2eb   :  { %2561 = vmatpush1.bf16.msra.mxu1 %v2560_v37  ;;  %v3336_v28 = vpop.f32.mrb[20].mxu1  ;;  %v1196_v37 = vld [vmem:[#allocation3 + $0x5c8] sm:$0xff] }
 0x2ec   :  { %2563 = vmatprep.subr.bf16.mxu1 %v2562_v20  ;;  %v3338_v39 = vpop.f32.mrb[21].mxu1  ;;  %v1198_v20 = vld [vmem:[#allocation3 + $0x5d8] sm:$0xff] }
 0x2ed   :  { %v2594_v24 = vpack.c.bf16 %v1198_v20, %v1196_v37  ;;  %v1578_v37 = vld [vmem:[#allocation5 + $0x238] sm:$0xff] }
 0x2ee   :  { %v2906_v20 = vld [vmem:[%s3599_s7 + $0x18] sm:$0xff] }
 0x2ef   :  { %2565 = vmatpush1.bf16.msra.mxu1 %v2564_v27  ;;  %v3340_v43 = vpop.f32.mrb[22].mxu1  ;;  %v1200_v27 = vld [vmem:[#allocation3 + $0x5e8] sm:$0xff] }
 0x2f0   :  { %2567 = vmatprep.subr.bf16.mxu1 %v2566_v31  ;;  %v3342_v48 = vpop.f32.mrb[23].mxu1  ;;  %v1202_v31 = vld [vmem:[#allocation3 + $0x5f8] sm:$0xff] }
 0x2f1   :  { %v2598_v33 = vpack.c.bf16 %v1202_v31, %v1200_v27  ;;  %v1580_v27 = vld [vmem:[#allocation5 + $0x248] sm:$0xff]  ;;  %v1582_v31 = vld [vmem:[#allocation5 + $0x258] sm:$0xff] }
 0x2f3   :  { %2569 = vmatpush1.bf16.msra.mxu1 %v2568_v45  ;;  %v2600_v45 = vpack.c.bf16 %v1201_v42, %v1199_v41  ;;  %v2626_v41 = vpack.c.bf16 %v1582_v31, %v1580_v27  ;;  %v1579_v42 = vld [vmem:[#allocation5 + $0x240] sm:$0xff]  ;;  %v1604_v27 = vld [vmem:[#allocation5 + $0x308] sm:$0xff]  ;;  %v1606_v31 = vld [vmem:[#allocation5 + $0x318] sm:$0xff] }
 0x2f4   :  { %2571 = vmatprep.subr.bf16.mxu1 %v2570_v44  ;;  %v1300_v44 = vld [vmem:[%s3596_s4] sm:$0x3] }
 0x2f7   :  { %2573 = vmatpush1.bf16.msra.mxu1 %v2572_v55 }
 0x2f8   :  { %2575 = vmatprep.subr.bf16.mxu1 %v2574_v56 }
 0x2fb   :  { %2577 = vmatpush1.bf16.msra.mxu1 %v2576_v61 }
 0x2fc   :  { %2579 = vmatprep.subr.bf16.mxu1 %v2578_v6 }
 0x2ff   :  { %2581 = vmatpush1.bf16.msra.mxu1 %v2580_v2 }
 0x300   :  { %2583 = vmatprep.subr.bf16.mxu1 %v2582_v3 }
 0x303   :  { %2585 = vmatpush1.bf16.msra.mxu1 %v2584_v8 }
 0x304   :  { %2587 = vmatprep.subr.bf16.mxu1 %v2586_v29  ;;  %v1572_v29 = vld [vmem:[#allocation5 + $0x208] sm:$0xff] }
 0x305   :  { %v2618_v30 = vpack.c.bf16 %v1574_v9, %v1572_v29  ;;  %v1594_v29 = vld [vmem:[#allocation5 + $0x2b8] sm:$0xff] }
 0x306   :  { %v2910_v9 = vld [vmem:[%s3599_s7 + $0x38] sm:$0xff] }
 0x307   :  { %2589 = vmatpush1.bf16.msra.mxu1 %v2588_v13  ;;  %v2905_v13 = vld [vmem:[%s3599_s7 + $0x10] sm:$0xff] }
 0x308   :  { %2591 = vmatprep.subr.bf16.mxu1 %v2590_v14  ;;  %v1571_v14 = vld [vmem:[#allocation5 + $0x200] sm:$0xff] }
 0x30b   :  { %2593 = vmatpush1.bf16.msra.mxu1 %v2592_v23  ;;  %v2620_v23 = vpack.c.bf16 %v1573_v15, %v1571_v14  ;;  %v1598_v14 = vld [vmem:[#allocation5 + $0x2d8] sm:$0xff] }
 0x30c   :  { %2595 = vmatprep.subr.bf16.mxu1 %v2594_v24  ;;  %v2622_v24 = vpack.c.bf16 %v1578_v37, %v1576_v16  ;;  %v1595_v37 = vld [vmem:[#allocation5 + $0x2c0] sm:$0xff] }
 0x30f   :  { %2597 = vmatpush1.bf16.msra.mxu1 %v2596_v32  ;;  %v2907_v32 = vld [vmem:[%s3599_s7 + $0x20] sm:$0xff] }
 0x310   :  { %2599 = vmatprep.subr.bf16.mxu1 %v2598_v33  ;;  %v2624_v33 = vpack.c.bf16 %v1577_v26, %v1575_v38  ;;  %v1601_v26 = vld [vmem:[#allocation5 + $0x2f0] sm:$0xff] }
 0x313   :  { %2601 = vmatpush1.bf16.msra.mxu1 %v2600_v45  ;;  %v1581_v45 = vld [vmem:[#allocation5 + $0x250] sm:$0xff] }
 0x316   :  { %1268 = vmatmul.mubr.f32.vlgmr.msra.gmra.mrb[24].mxu1 %v3330_v11  ;;  %v1309_v11 = vrot.slane %v1300_v44, %v3266_v17 }
 0x317   :  { %1273 = vmatprep.mubr.f32.mxu1 %v3334_v25  ;;  %v1305_v25 = vrot.slane %v1300_v44, %v3271_v19  ;;  %v1584_v44 = vld [vmem:[#allocation5 + $0x268] sm:$0xff] }
 0x31a   :  { %1274 = vmatmul.mubr.f32.gmra.mrb[26].mxu1 %v3332_v18 }
 0x31b   :  { %1279 = vmatprep.mubr.f32.mxu1 %v3338_v39 }
 0x31e   :  { %1280 = vmatmul.mubr.f32.gmra.mrb[28].mxu1 %v3336_v28 }
 0x31f   :  { %1285 = vmatprep.mubr.f32.mxu1 %v3342_v48 }
 0x322   :  { %1286 = vmatmul.mubr.f32.gmra.mrb[30].mxu1 %v3340_v43 }
 0x323   :  { %2079 = vmatprep.mubr.f32.mxu1 %v2963_v0 }
 0x3e9   :  { %v1269_v46 = vpop.f32.mrb[24].mxu1 }
 0x3ea   :  { %v1271_v18 = vpop.f32.mrb[25].mxu1  ;;  %v3359_v28 = vadd.f32 %v1305_v25, %v1269_v46  ;;  %v1586_v46 = vld [vmem:[#allocation5 + $0x278] sm:$0xff] }
 0x3eb   :  { %v3357_v47 = vadd.f32 %v1309_v11, %v1271_v18  ;;  %v2630_v18 = vpack.c.bf16 %v1586_v46, %v1584_v44  ;;  %v1610_v44 = vld [vmem:[#allocation5 + $0x338] sm:$0xff] }
 0x3ec   :  { %v1320_v58 = vmax.f32 %v3359_v28, 0.0 }
 0x3ed   :  { %v1275_v39 = vpop.f32.mrb[26].mxu1  ;;  %v1321_v55 = vmax.f32 %v3357_v47, 0.0 }
 0x3ee   :  { %v3361_v48 = vadd.f32 %v1305_v25, %v1275_v39  ;;  %v1277_v43 = vpop.f32.mrb[27].mxu1  ;;  %v1583_v39 = vld [vmem:[#allocation5 + $0x260] sm:$0xff] }
 0x3ef   :  { %v3363_v49 = vadd.f32 %v1309_v11, %v1277_v43  ;;  %v1585_v43 = vld [vmem:[#allocation5 + $0x270] sm:$0xff] }
 0x3f0   :  { %v1322_v50 = vmax.f32 %v3361_v48, 0.0 }
 0x3f1   :  { %v1323_v56 = vmax.f32 %v3363_v49, 0.0  ;;  %v1281_v57 = vpop.f32.mrb[28].mxu1  ;;  %v1518_v49 = vld [vmem:[#allocation5 + $0x60] sm:$0xff] }
 0x3f2   :  { %v1283_v59 = vpop.f32.mrb[29].mxu1  ;;  %v2604_v61 = vpack.c.bf16 %v1322_v50, %v1320_v58  ;;  %v3379_v63 = vadd.f32 %v1305_v25, %v1281_v57  ;;  %v1588_v57 = vld [vmem:[#allocation5 + $0x288] sm:$0xff] }
 0x3f3   :  { %v2602_v60 = vpack.c.bf16 %v1323_v56, %v1321_v55  ;;  %v3377_v6 = vadd.f32 %v1309_v11, %v1283_v59  ;;  %v1590_v59 = vld [vmem:[#allocation5 + $0x298] sm:$0xff] }
 0x3f4   :  { %v1324_v5 = vmax.f32 %v3379_v63, 0.0  ;;  %v1526_v63 = vld [vmem:[#allocation5 + $0xa0] sm:$0xff] }
 0x3f5   :  { %v1287_v62 = vpop.f32.mrb[30].mxu1  ;;  %2603 = vmatprep.subr.bf16.mxu0 %v2602_v60  ;;  %v1325_v4 = vmax.f32 %v3377_v6, 0.0  ;;  %v1522_v6 = vld [vmem:[#allocation5 + $0x80] sm:$0xff] }
 0x3f6   :  { %v3381_v21 = vadd.f32 %v1305_v25, %v1287_v62  ;;  %v1289_v1 = vpop.f32.mrb[31].mxu1  ;;  %2605 = vmatpush1.bf16.msra.mxu0 %v2604_v61  ;;  %v2628_v25 = vpack.c.bf16 %v1581_v45, %v1579_v42  ;;  %v2634_v62 = vpack.c.bf16 %v1590_v59, %v1588_v57  ;;  %v1605_v42 = vld [vmem:[#allocation5 + $0x310] sm:$0xff]  ;;  %v1608_v45 = vld [vmem:[#allocation5 + $0x328] sm:$0xff] }
 0x3f7   :  { %v3383_v2 = vadd.f32 %v1309_v11, %v1289_v1  ;;  %v2908_v11 = vld [vmem:[%s3599_s7 + $0x28] sm:$0xff]  ;;  %v1587_v1 = vld [vmem:[#allocation5 + $0x280] sm:$0xff] }
 0x3f8   :  { %v1326_v3 = vmax.f32 %v3381_v21, 0.0 }
 0x3f9   :  { %v1327_v22 = vmax.f32 %v3383_v2, 0.0  ;;  %v1533_v2 = vld [vmem:[#allocation5 + $0xd8] sm:$0xff] }
 0x3fa   :  { %v2608_v8 = vpack.c.bf16 %v1326_v3, %v1324_v5 }
 0x3fb   :  { %v2606_v7 = vpack.c.bf16 %v1327_v22, %v1325_v4 }
 0x3fd   :  { %2607 = vmatprep.subr.bf16.mxu0 %v2606_v7 }
 0x3fe   :  { %2609 = vmatpush1.bf16.msra.mxu0 %v2608_v8 }
 0x3ff   :  { %2611 = vmatprep.subr.bf16.mxu0 %v2602_v60  ;;  %v2909_v60 = vld [vmem:[%s3599_s7 + $0x30] sm:$0xff] }
 0x401   :  { %2254 = vmatmul.mubr.msk.f32.vlgmr.msra.gmra.mrb[8].mxu0 %vm80_vm0, %v2903_v10 }
 0x402   :  { %2613 = vmatpush1.bf16.msra.mxu0 %v2604_v61  ;;  %1398 = vmatprep.mubr.f32.mxu0 %v2963_v0  ;;  %v2632_v61 = vpack.c.bf16 %v1585_v43, %v1583_v39  ;;  %v1612_v39 = vld [vmem:[#allocation5 + $0x348] sm:$0xff]  ;;  %v1614_v43 = vld [vmem:[#allocation5 + $0x358] sm:$0xff] }
 0x403   :  { %2615 = vmatprep.subr.bf16.mxu0 %v2606_v7  ;;  %v1589_v7 = vld [vmem:[#allocation5 + $0x290] sm:$0xff]  ;;  %v2658_v59 = vpack.c.bf16 %v1614_v43, %v1612_v39  ;;  %v1506_v39 = vld [vmem:[#allocation5] sm:$0xff] }
 0x404   :  { %v2636_v10 = vpack.c.bf16 %v1589_v7, %v1587_v1  ;;  %v1618_v1 = vld [vmem:[#allocation5 + $0x378] sm:$0xff]  ;;  %v1508_v43 = vld [vmem:[#allocation5 + $0x10] sm:$0xff] }
 0x405   :  { %2255 = vmatmul.mubr.msk.f32.gmra.mrb[10].mxu0 %vm80_vm0, %v2904_v12  ;;  %v1593_v12 = vld [vmem:[#allocation5 + $0x2b0] sm:$0xff] }
 0x406   :  { %2617 = vmatpush1.bf16.msra.mxu0 %v2608_v8  ;;  %1404 = vmatprep.mubr.f32.mxu0 %v2963_v0  ;;  %v1592_v8 = vld [vmem:[#allocation5 + $0x2a8] sm:$0xff] }
 0x407   :  { %2619 = vmatprep.subr.bf16.mxu0 %v2618_v30  ;;  %v1591_v30 = vld [vmem:[#allocation5 + $0x2a0] sm:$0xff] }
 0x408   :  { %v2640_v15 = vpack.c.bf16 %v1593_v12, %v1591_v30 }
 0x409   :  { %2256 = vmatmul.mubr.msk.f32.gmra.mrb[12].mxu0 %vm80_vm0, %v2905_v13  ;;  %v1596_v13 = vld [vmem:[#allocation5 + $0x2c8] sm:$0xff] }
 0x40a   :  { %1410 = vmatprep.mubr.f32.mxu0 %v2963_v0  ;;  %v2642_v16 = vpack.c.bf16 %v1598_v14, %v1596_v13  ;;  %v1619_v13 = vld [vmem:[#allocation5 + $0x380] sm:$0xff]  ;;  %v1621_v14 = vld [vmem:[#allocation5 + $0x390] sm:$0xff] }
 0x40d   :  { %2257 = vmatmul.mubr.msk.f32.gmra.mrb[14].mxu0 %vm80_vm0, %v2906_v20  ;;  %v1597_v20 = vld [vmem:[#allocation5 + $0x2d0] sm:$0xff] }
 0x40e   :  { %1481 = vmatprep.mubr.f32.mxu0 %v2963_v0  ;;  %v2644_v38 = vpack.c.bf16 %v1597_v20, %v1595_v37  ;;  %v2668_v37 = vpack.c.bf16 %v1621_v14, %v1619_v13  ;;  %v1523_v13 = vld [vmem:[#allocation5 + $0x88] sm:$0xff]  ;;  %v1525_v14 = vld [vmem:[#allocation5 + $0x98] sm:$0xff] }
 0x411   :  { %2258 = vmatmul.mubr.msk.f32.vlgmr.msra.gmra.mrb[16].mxu0 %vm80_vm0, %v2907_v32 }
 0x412   :  { %2621 = vmatpush1.bf16.msra.mxu0 %v2620_v23  ;;  %1487 = vmatprep.mubr.f32.mxu0 %v2963_v0  ;;  %v1600_v23 = vld [vmem:[#allocation5 + $0x2e8] sm:$0xff] }
 0x413   :  { %2623 = vmatprep.subr.bf16.mxu0 %v2622_v24  ;;  %v1602_v24 = vld [vmem:[#allocation5 + $0x2f8] sm:$0xff] }
 0x414   :  { %v2646_v47 = vpack.c.bf16 %v1602_v24, %v1600_v23  ;;  %v1623_v23 = vld [vmem:[#allocation5 + $0x3a0] sm:$0xff]  ;;  %v1625_v24 = vld [vmem:[#allocation5 + $0x3b0] sm:$0xff] }
 0x415   :  { %2259 = vmatmul.mubr.msk.f32.gmra.mrb[18].mxu0 %vm80_vm0, %v2908_v11  ;;  %v2654_v11 = vpack.c.bf16 %v1610_v44, %v1608_v45  ;;  %v1631_v45 = vld [vmem:[#allocation5 + $0x3e0] sm:$0xff]  ;;  %v1633_v44 = vld [vmem:[#allocation5 + $0x3f0] sm:$0xff] }
 0x416   :  { %2625 = vmatpush1.bf16.msra.mxu0 %v2624_v33  ;;  %1493 = vmatprep.mubr.f32.mxu0 %v2963_v0  ;;  %v2650_v33 = vpack.c.bf16 %v1606_v31, %v1604_v27  ;;  %v1627_v27 = vld [vmem:[#allocation5 + $0x3c0] sm:$0xff]  ;;  %v1629_v31 = vld [vmem:[#allocation5 + $0x3d0] sm:$0xff] }
 0x417   :  { %2627 = vmatprep.subr.bf16.mxu0 %v2626_v41  ;;  %v1603_v41 = vld [vmem:[#allocation5 + $0x300] sm:$0xff] }
 0x418   :  { %v2652_v46 = vpack.c.bf16 %v1605_v42, %v1603_v41  ;;  %v2676_v41 = vpack.c.bf16 %v1629_v31, %v1627_v27  ;;  %v1536_v31 = vld [vmem:[#allocation5 + $0xf0] sm:$0xff] }
 0x419   :  { %2260 = vmatmul.mubr.msk.f32.gmra.mrb[20].mxu0 %vm80_vm0, %v2909_v60  ;;  %v1611_v60 = vld [vmem:[#allocation5 + $0x340] sm:$0xff] }
 0x41a   :  { %2629 = vmatpush1.bf16.msra.mxu0 %v2628_v25  ;;  %1499 = vmatprep.mubr.f32.mxu0 %v2963_v0  ;;  %v2638_v0 = vpack.c.bf16 %v1594_v29, %v1592_v8  ;;  %v1607_v25 = vld [vmem:[#allocation5 + $0x320] sm:$0xff] }
 0x41b   :  { %2631 = vmatprep.subr.bf16.mxu0 %v2630_v18  ;;  %v1609_v18 = vld [vmem:[#allocation5 + $0x330] sm:$0xff]  ;;  %v1615_v29 = vld [vmem:[#allocation5 + $0x360] sm:$0xff] }
 0x41c   :  { %v2656_v57 = vpack.c.bf16 %v1609_v18, %v1607_v25  ;;  %v2680_v25 = vpack.c.bf16 %v1633_v44, %v1631_v45  ;;  %v1538_v45 = vld [vmem:[#allocation5 + $0x100] sm:$0xff]  ;;  %v1540_v44 = vld [vmem:[#allocation5 + $0x110] sm:$0xff] }
 0x41d   :  { %2261 = vmatmul.mubr.msk.f32.gmra.mrb[22].mxu0 %vm80_vm0, %v2910_v9  ;;  %v1617_v9 = vld [vmem:[#allocation5 + $0x370] sm:$0xff] }
 0x41e   :  { %2633 = vmatpush1.bf16.msra.mxu0 %v2632_v61  ;;  %1699 = vmatprep.mubr.f32.mxu0 %v1321_v55  ;;  %v1599_v55 = vld [vmem:[#allocation5 + $0x2e0] sm:$0xff]  ;;  %v1613_v61 = vld [vmem:[#allocation5 + $0x350] sm:$0xff]  ;;  %v2664_v30 = vpack.c.bf16 %v1617_v9, %v1615_v29 }
 0x41f   :  { %2635 = vmatprep.subr.bf16.mxu0 %v2634_v62  ;;  %v2648_v32 = vpack.c.bf16 %v1601_v26, %v1599_v55  ;;  %v1616_v62 = vld [vmem:[#allocation5 + $0x368] sm:$0xff]  ;;  %v2660_v7 = vpack.c.bf16 %v1613_v61, %v1611_v60  ;;  %v2672_v55 = vpack.c.bf16 %v1625_v24, %v1623_v23  ;;  %v2684_v60 = vpack.c.bf16 %v1508_v43, %v1506_v39  ;;  %v1542_v39 = vld [vmem:[#allocation5 + $0x120] sm:$0xff]  ;;  %v1544_v43 = vld [vmem:[#allocation5 + $0x130] sm:$0xff] }
 0x420   :  { %v2662_v8 = vpack.c.bf16 %v1618_v1, %v1616_v62  ;;  %v1510_v62 = vld [vmem:[#allocation5 + $0x20] sm:$0xff]  ;;  %v1512_v1 = vld [vmem:[#allocation5 + $0x30] sm:$0xff]  ;;  %v1531_v23 = vld [vmem:[#allocation5 + $0xc8] sm:$0xff] }
 0x421   :  { %v2688_v29 = vpack.c.bf16 %v1512_v1, %v1510_v62  ;;  %v2706_v24 = vpack.c.bf16 %v1533_v2, %v1531_v23  ;;  %v1546_v62 = vld [vmem:[#allocation5 + $0x140] sm:$0xff]  ;;  %v1548_v1 = vld [vmem:[#allocation5 + $0x150] sm:$0xff]  ;;  %v1567_v23 = vld [vmem:[#allocation5 + $0x1e8] sm:$0xff] }
 0x422   :  { %2637 = vmatpush1.bf16.msra.mxu0 %v2636_v10  ;;  %v1620_v10 = vld [vmem:[#allocation5 + $0x388] sm:$0xff]  ;;  %v1569_v2 = vld [vmem:[#allocation5 + $0x1f8] sm:$0xff] }
 0x423   :  { %2639 = vmatprep.subr.bf16.mxu0 %v2638_v0  ;;  %v1622_v0 = vld [vmem:[#allocation5 + $0x398] sm:$0xff] }
 0x424   :  { %v2666_v12 = vpack.c.bf16 %v1622_v0, %v1620_v10  ;;  %v1514_v10 = vld [vmem:[#allocation5 + $0x40] sm:$0xff]  ;;  %v1516_v0 = vld [vmem:[#allocation5 + $0x50] sm:$0xff] }
 0x425   :  { %v2692_v28 = vpack.c.bf16 %v1516_v0, %v1514_v10  ;;  %v1550_v10 = vld [vmem:[#allocation5 + $0x160] sm:$0xff]  ;;  %v1552_v0 = vld [vmem:[#allocation5 + $0x170] sm:$0xff] }
 0x426   :  { %2641 = vmatpush1.bf16.msra.mxu0 %v2640_v15  ;;  %v1624_v15 = vld [vmem:[#allocation5 + $0x3a8] sm:$0xff] }
 0x427   :  { %2643 = vmatprep.subr.bf16.mxu0 %v2642_v16  ;;  %v1626_v16 = vld [vmem:[#allocation5 + $0x3b8] sm:$0xff] }
 0x428   :  { %v2670_v20 = vpack.c.bf16 %v1626_v16, %v1624_v15  ;;  %v1527_v15 = vld [vmem:[#allocation5 + $0xa8] sm:$0xff]  ;;  %v1529_v16 = vld [vmem:[#allocation5 + $0xb8] sm:$0xff] }
 0x42a   :  { %2645 = vmatpush1.bf16.msra.mxu0 %v2644_v38  ;;  %v1628_v38 = vld [vmem:[#allocation5 + $0x3c8] sm:$0xff] }
 0x42b   :  { %2647 = vmatprep.subr.bf16.mxu0 %v2646_v47  ;;  %v1630_v47 = vld [vmem:[#allocation5 + $0x3d8] sm:$0xff] }
 0x42c   :  { %v2674_v26 = vpack.c.bf16 %v1630_v47, %v1628_v38  ;;  %v1530_v38 = vld [vmem:[#allocation5 + $0xc0] sm:$0xff]  ;;  %v1532_v47 = vld [vmem:[#allocation5 + $0xd0] sm:$0xff] }
 0x42d   :  { %v2708_v27 = vpack.c.bf16 %v1532_v47, %v1530_v38  ;;  %v1566_v38 = vld [vmem:[#allocation5 + $0x1e0] sm:$0xff]  ;;  %v1568_v47 = vld [vmem:[#allocation5 + $0x1f0] sm:$0xff] }
 0x42e   :  { %2649 = vmatpush1.bf16.msra.mxu0 %v2648_v32  ;;  %v1632_v32 = vld [vmem:[#allocation5 + $0x3e8] sm:$0xff] }
 0x42f   :  { %2651 = vmatprep.subr.bf16.mxu0 %v2650_v33  ;;  %v1634_v33 = vld [vmem:[#allocation5 + $0x3f8] sm:$0xff] }
 0x430   :  { %v2678_v42 = vpack.c.bf16 %v1634_v33, %v1632_v32  ;;  %v1539_v32 = vld [vmem:[#allocation5 + $0x108] sm:$0xff]  ;;  %v1541_v33 = vld [vmem:[#allocation5 + $0x118] sm:$0xff] }
 0x432   :  { %2653 = vmatpush1.bf16.msra.mxu0 %v2652_v46  ;;  %v1507_v46 = vld [vmem:[#allocation5 + $0x8] sm:$0xff] }
 0x433   :  { %2655 = vmatprep.subr.bf16.mxu0 %v2654_v11  ;;  %v1509_v11 = vld [vmem:[#allocation5 + $0x18] sm:$0xff] }
 0x434   :  { %v2682_v18 = vpack.c.bf16 %v1509_v11, %v1507_v46  ;;  %v1543_v46 = vld [vmem:[#allocation5 + $0x128] sm:$0xff]  ;;  %v1545_v11 = vld [vmem:[#allocation5 + $0x138] sm:$0xff] }
 0x436   :  { %2657 = vmatpush1.bf16.msra.mxu0 %v2656_v57  ;;  %v1511_v57 = vld [vmem:[#allocation5 + $0x28] sm:$0xff] }
 0x437   :  { %2659 = vmatprep.subr.bf16.mxu0 %v2658_v59  ;;  %v1513_v59 = vld [vmem:[#allocation5 + $0x38] sm:$0xff] }
 0x438   :  { %v2686_v61 = vpack.c.bf16 %v1513_v59, %v1511_v57  ;;  %v1547_v57 = vld [vmem:[#allocation5 + $0x148] sm:$0xff]  ;;  %v1549_v59 = vld [vmem:[#allocation5 + $0x158] sm:$0xff] }
 0x43a   :  { %2661 = vmatpush1.bf16.msra.mxu0 %v2660_v7  ;;  %v1515_v7 = vld [vmem:[#allocation5 + $0x48] sm:$0xff] }
 0x43b   :  { %2663 = vmatprep.subr.bf16.mxu0 %v2662_v8  ;;  %v1517_v8 = vld [vmem:[#allocation5 + $0x58] sm:$0xff] }
 0x43c   :  { %v2690_v9 = vpack.c.bf16 %v1517_v8, %v1515_v7  ;;  %v1551_v7 = vld [vmem:[#allocation5 + $0x168] sm:$0xff]  ;;  %v1553_v8 = vld [vmem:[#allocation5 + $0x178] sm:$0xff] }
 0x43e   :  { %2665 = vmatpush1.bf16.msra.mxu0 %v2664_v30  ;;  %v1519_v30 = vld [vmem:[#allocation5 + $0x68] sm:$0xff] }
 0x43f   :  { %2667 = vmatprep.subr.bf16.mxu0 %v2666_v12  ;;  %v1521_v12 = vld [vmem:[#allocation5 + $0x78] sm:$0xff] }
 0x442   :  { %2669 = vmatpush1.bf16.msra.mxu0 %v2668_v37 }
 0x443   :  { %2671 = vmatprep.subr.bf16.mxu0 %v2670_v20  ;;  %v2702_v20 = vpack.c.bf16 %v1529_v16, %v1527_v15  ;;  %v1563_v15 = vld [vmem:[#allocation5 + $0x1c8] sm:$0xff]  ;;  %v1565_v16 = vld [vmem:[#allocation5 + $0x1d8] sm:$0xff] }
 0x446   :  { %2673 = vmatpush1.bf16.msra.mxu0 %v2672_v55  ;;  %v1535_v55 = vld [vmem:[#allocation5 + $0xe8] sm:$0xff] }
 0x447   :  { %2675 = vmatprep.subr.bf16.mxu0 %v2674_v26  ;;  %v1537_v26 = vld [vmem:[#allocation5 + $0xf8] sm:$0xff] }
 0x448   :  { %v2710_v21 = vpack.c.bf16 %v1537_v26, %v1535_v55  ;;  %v1815_v55 = vld [vmem:[#allocation5 + $0x408] sm:$0xff]  ;;  %v1817_v26 = vld [vmem:[#allocation5 + $0x418] sm:$0xff] }
 0x44a   :  { %2677 = vmatpush1.bf16.msra.mxu0 %v2676_v41 }
 0x44b   :  { %2679 = vmatprep.subr.bf16.mxu0 %v2678_v42  ;;  %v2714_v42 = vpack.c.bf16 %v1541_v33, %v1539_v32  ;;  %v1819_v32 = vld [vmem:[#allocation5 + $0x428] sm:$0xff]  ;;  %v1821_v33 = vld [vmem:[#allocation5 + $0x438] sm:$0xff] }
 0x44e   :  { %2681 = vmatpush1.bf16.msra.mxu0 %v2680_v25  ;;  %v2716_v25 = vpack.c.bf16 %v1540_v44, %v1538_v45  ;;  %v2750_v44 = vpack.c.bf16 %v1821_v33, %v1819_v32  ;;  %v1844_v32 = vld [vmem:[#allocation5 + $0x4f0] sm:$0xff] }
 0x44f   :  { %2683 = vmatprep.subr.bf16.mxu0 %v2682_v18  ;;  %v2718_v18 = vpack.c.bf16 %v1545_v11, %v1543_v46  ;;  %v1818_v46 = vld [vmem:[#allocation5 + $0x420] sm:$0xff]  ;;  %v1820_v11 = vld [vmem:[#allocation5 + $0x430] sm:$0xff] }
 0x451   :  { %1700 = vmatmul.mubr.f32.vlgmr.msra.gmra.mrb[24].mxu0 %v1320_v58  ;;  %v2694_v58 = vpack.c.bf16 %v1521_v12, %v1519_v30  ;;  %v1555_v30 = vld [vmem:[#allocation5 + $0x188] sm:$0xff]  ;;  %v1557_v12 = vld [vmem:[#allocation5 + $0x198] sm:$0xff] }
 0x452   :  { %1705 = vmatprep.mubr.f32.mxu0 %v1323_v56  ;;  %2685 = vmatpush1.bf16.msra.mxu0 %v2684_v60  ;;  %v1520_v56 = vld [vmem:[#allocation5 + $0x70] sm:$0xff]  ;;  %v2720_v60 = vpack.c.bf16 %v1544_v43, %v1542_v39  ;;  %v2752_v39 = vpack.c.bf16 %v1820_v11, %v1818_v46  ;;  %v1846_v11 = vld [vmem:[#allocation5 + $0x500] sm:$0xff] }
 0x453   :  { %2687 = vmatprep.subr.bf16.mxu0 %v2686_v61  ;;  %v2696_v48 = vpack.c.bf16 %v1520_v56, %v1518_v49  ;;  %v2722_v61 = vpack.c.bf16 %v1549_v59, %v1547_v57  ;;  %v1554_v49 = vld [vmem:[#allocation5 + $0x180] sm:$0xff]  ;;  %v1556_v56 = vld [vmem:[#allocation5 + $0x190] sm:$0xff] }
 0x454   :  { %v1822_v59 = vld [vmem:[#allocation5 + $0x440] sm:$0xff] }
 0x455   :  { %1706 = vmatmul.mubr.f32.gmra.mrb[26].mxu0 %v1322_v50  ;;  %v2698_v50 = vpack.c.bf16 %v1525_v14, %v1523_v13  ;;  %v1559_v13 = vld [vmem:[#allocation5 + $0x1a8] sm:$0xff]  ;;  %v1561_v14 = vld [vmem:[#allocation5 + $0x1b8] sm:$0xff] }
 0x456   :  { %1711 = vmatprep.mubr.f32.mxu0 %v1325_v4  ;;  %2689 = vmatpush1.bf16.msra.mxu0 %v2688_v29  ;;  %v1524_v4 = vld [vmem:[#allocation5 + $0x90] sm:$0xff]  ;;  %v2724_v29 = vpack.c.bf16 %v1548_v1, %v1546_v62  ;;  %v1827_v62 = vld [vmem:[#allocation5 + $0x468] sm:$0xff]  ;;  %v1829_v1 = vld [vmem:[#allocation5 + $0x478] sm:$0xff] }
 0x457   :  { %2691 = vmatprep.subr.bf16.mxu0 %v2690_v9  ;;  %v2700_v37 = vpack.c.bf16 %v1524_v4, %v1522_v6  ;;  %v2726_v9 = vpack.c.bf16 %v1553_v8, %v1551_v7  ;;  %v1558_v6 = vld [vmem:[#allocation5 + $0x1a0] sm:$0xff]  ;;  %v1560_v4 = vld [vmem:[#allocation5 + $0x1b0] sm:$0xff] }
 0x459   :  { %1712 = vmatmul.mubr.f32.gmra.mrb[28].mxu0 %v1324_v5  ;;  %v1528_v5 = vld [vmem:[#allocation5 + $0xb0] sm:$0xff] }
 0x45a   :  { %1717 = vmatprep.mubr.f32.mxu0 %v1327_v22  ;;  %2693 = vmatpush1.bf16.msra.mxu0 %v2692_v28  ;;  %v2704_v22 = vpack.c.bf16 %v1528_v5, %v1526_v63  ;;  %v2728_v28 = vpack.c.bf16 %v1552_v0, %v1550_v10  ;;  %v1562_v63 = vld [vmem:[#allocation5 + $0x1c0] sm:$0xff]  ;;  %v1564_v5 = vld [vmem:[#allocation5 + $0x1d0] sm:$0xff] }
 0x45b   :  { %2695 = vmatprep.subr.bf16.mxu0 %v2694_v58  ;;  %v2730_v58 = vpack.c.bf16 %v1557_v12, %v1555_v30  ;;  %v1828_v10 = vld [vmem:[#allocation5 + $0x470] sm:$0xff]  ;;  %v1831_v30 = vld [vmem:[#allocation5 + $0x488] sm:$0xff]  ;;  %v1833_v12 = vld [vmem:[#allocation5 + $0x498] sm:$0xff] }
 0x45d   :  { %1718 = vmatmul.mubr.f32.gmra.mrb[30].mxu0 %v1326_v3  ;;  %v1534_v3 = vld [vmem:[#allocation5 + $0xe0] sm:$0xff] }
 0x45e   :  { %2697 = vmatpush1.bf16.msra.mxu0 %v2696_v48  ;;  %v2712_v41 = vpack.c.bf16 %v1536_v31, %v1534_v3  ;;  %v2732_v48 = vpack.c.bf16 %v1556_v56, %v1554_v49  ;;  %v1814_v3 = vld [vmem:[#allocation5 + $0x400] sm:$0xff]  ;;  %v1816_v31 = vld [vmem:[#allocation5 + $0x410] sm:$0xff]  ;;  %v2762_v49 = vpack.c.bf16 %v1833_v12, %v1831_v30 }
 0x45f   :  { %2699 = vmatprep.subr.bf16.mxu0 %v2698_v50  ;;  %v2734_v50 = vpack.c.bf16 %v1561_v14, %v1559_v13  ;;  %v1830_v56 = vld [vmem:[#allocation5 + $0x480] sm:$0xff]  ;;  %v1832_v13 = vld [vmem:[#allocation5 + $0x490] sm:$0xff] }
 0x462   :  { %2701 = vmatpush1.bf16.msra.mxu0 %v2700_v37  ;;  %v2736_v37 = vpack.c.bf16 %v1560_v4, %v1558_v6  ;;  %v2764_v6 = vpack.c.bf16 %v1832_v13, %v1830_v56  ;;  %v1865_v56 = vld [vmem:[#allocation5 + $0x598] sm:$0xff] }
 0x463   :  { %2703 = vmatprep.subr.bf16.mxu0 %v2702_v20  ;;  %v2738_v20 = vpack.c.bf16 %v1565_v16, %v1563_v15  ;;  %v1834_v16 = vld [vmem:[#allocation5 + $0x4a0] sm:$0xff] }
 0x466   :  { %2705 = vmatpush1.bf16.msra.mxu0 %v2704_v22  ;;  %v2740_v22 = vpack.c.bf16 %v1564_v5, %v1562_v63  ;;  %v1839_v63 = vld [vmem:[#allocation5 + $0x4c8] sm:$0xff]  ;;  %v1841_v5 = vld [vmem:[#allocation5 + $0x4d8] sm:$0xff] }
 0x467   :  { %2707 = vmatprep.subr.bf16.mxu0 %v2706_v24  ;;  %v2742_v24 = vpack.c.bf16 %v1569_v2, %v1567_v23 }
 0x46a   :  { %2709 = vmatpush1.bf16.msra.mxu0 %v2708_v27  ;;  %v2744_v27 = vpack.c.bf16 %v1568_v47, %v1566_v38  ;;  %v1840_v38 = vld [vmem:[#allocation5 + $0x4d0] sm:$0xff] }
 0x46b   :  { %2711 = vmatprep.subr.bf16.mxu0 %v2710_v21  ;;  %v2746_v21 = vpack.c.bf16 %v1817_v26, %v1815_v55  ;;  %v1843_v55 = vld [vmem:[#allocation5 + $0x4e8] sm:$0xff]  ;;  %v1845_v26 = vld [vmem:[#allocation5 + $0x4f8] sm:$0xff] }
 0x46e   :  { %2713 = vmatpush1.bf16.msra.mxu0 %v2712_v41 }
 0x46f   :  { %2715 = vmatprep.subr.bf16.mxu0 %v2714_v42  ;;  %v2748_v42 = vpack.c.bf16 %v1816_v31, %v1814_v3  ;;  %v2774_v3 = vpack.c.bf16 %v1845_v26, %v1843_v55  ;;  %v1842_v31 = vld [vmem:[#allocation5 + $0x4e0] sm:$0xff]  ;;  %v1872_v55 = vld [vmem:[#allocation5 + $0x5d0] sm:$0xff]  ;;  %v1875_v26 = vld [vmem:[#allocation5 + $0x5e8] sm:$0xff] }
 0x472   :  { %2717 = vmatpush1.bf16.msra.mxu0 %v2716_v25  ;;  %v1823_v25 = vld [vmem:[#allocation5 + $0x448] sm:$0xff] }
 0x473   :  { %2719 = vmatprep.subr.bf16.mxu0 %v2718_v18  ;;  %v1825_v18 = vld [vmem:[#allocation5 + $0x458] sm:$0xff] }
 0x474   :  { %v2754_v57 = vpack.c.bf16 %v1825_v18, %v1823_v25  ;;  %v1848_v25 = vld [vmem:[#allocation5 + $0x510] sm:$0xff] }
 0x476   :  { %2721 = vmatpush1.bf16.msra.mxu0 %v2720_v60  ;;  %v1824_v60 = vld [vmem:[#allocation5 + $0x450] sm:$0xff] }
 0x477   :  { %2723 = vmatprep.subr.bf16.mxu0 %v2722_v61  ;;  %v2756_v7 = vpack.c.bf16 %v1824_v60, %v1822_v59  ;;  %v1850_v60 = vld [vmem:[#allocation5 + $0x520] sm:$0xff] }
 0x47a   :  { %2725 = vmatpush1.bf16.msra.mxu0 %v2724_v29  ;;  %v2758_v29 = vpack.c.bf16 %v1829_v1, %v1827_v62  ;;  %v1855_v62 = vld [vmem:[#allocation5 + $0x548] sm:$0xff]  ;;  %v1857_v1 = vld [vmem:[#allocation5 + $0x558] sm:$0xff] }
 0x47b   :  { %2727 = vmatprep.subr.bf16.mxu0 %v2726_v9  ;;  %v1826_v9 = vld [vmem:[#allocation5 + $0x460] sm:$0xff] }
 0x47e   :  { %2729 = vmatpush1.bf16.msra.mxu0 %v2728_v28  ;;  %v2760_v28 = vpack.c.bf16 %v1828_v10, %v1826_v9  ;;  %v1856_v9 = vld [vmem:[#allocation5 + $0x550] sm:$0xff]  ;;  %v1859_v10 = vld [vmem:[#allocation5 + $0x568] sm:$0xff] }
 0x47f   :  { %2731 = vmatprep.subr.bf16.mxu0 %v2730_v58 }
 0x482   :  { %2733 = vmatpush1.bf16.msra.mxu0 %v2732_v48  ;;  %v1835_v48 = vld [vmem:[#allocation5 + $0x4a8] sm:$0xff] }
 0x483   :  { %2735 = vmatprep.subr.bf16.mxu0 %v2734_v50  ;;  %v1837_v50 = vld [vmem:[#allocation5 + $0x4b8] sm:$0xff] }
 0x484   :  { %v2766_v15 = vpack.c.bf16 %v1837_v50, %v1835_v48  ;;  %v1862_v48 = vld [vmem:[#allocation5 + $0x580] sm:$0xff]  ;;  %v1864_v50 = vld [vmem:[#allocation5 + $0x590] sm:$0xff] }
 0x486   :  { %2737 = vmatpush1.bf16.msra.mxu0 %v2736_v37  ;;  %v1836_v37 = vld [vmem:[#allocation5 + $0x4b0] sm:$0xff] }
 0x487   :  { %2739 = vmatprep.subr.bf16.mxu0 %v2738_v20  ;;  %v2768_v23 = vpack.c.bf16 %v1836_v37, %v1834_v16  ;;  %v2796_v16 = vpack.c.bf16 %v1864_v50, %v1862_v48  ;;  %v2104_v50 = vld [vmem:[%s3601_s9 + $0x90] sm:$0xff] }
 0x48a   :  { %2741 = vmatpush1.bf16.msra.mxu0 %v2740_v22  ;;  %v2770_v22 = vpack.c.bf16 %v1841_v5, %v1839_v63  ;;  %v1868_v63 = vld [vmem:[#allocation5 + $0x5b0] sm:$0xff]  ;;  %v1871_v5 = vld [vmem:[#allocation5 + $0x5c8] sm:$0xff] }
 0x48b   :  { %2743 = vmatprep.subr.bf16.mxu0 %v2742_v24  ;;  %v1838_v24 = vld [vmem:[#allocation5 + $0x4c0] sm:$0xff] }
 0x48e   :  { %2745 = vmatpush1.bf16.msra.mxu0 %v2744_v27  ;;  %v2772_v27 = vpack.c.bf16 %v1840_v38, %v1838_v24  ;;  %v1870_v38 = vld [vmem:[#allocation5 + $0x5c0] sm:$0xff] }
 0x48f   :  { %2747 = vmatprep.subr.bf16.mxu0 %v2746_v21 }
 0x4d4   :  { %v1394_v41 = vpop.f32.mrb[8].mxu0 }
 0x4d5   :  { %v1396_v45 = vpop.f32.mrb[9].mxu0 }
 0x4d6   :  { %1788 = vmatprep.mubr.f32.mxu0 %v1396_v45  ;;  %v2776_v45 = vpack.c.bf16 %v1844_v32, %v1842_v31  ;;  %v1874_v32 = vld [vmem:[#allocation5 + $0x5e0] sm:$0xff] }
 0x4d7   :  { %1789 = vmatmul.mubr.f32.vlgmr.msra.gmra.mrb[24].mxu0 %v1394_v41  ;;  %v1847_v41 = vld [vmem:[#allocation5 + $0x508] sm:$0xff] }
 0x4d8   :  { %2749 = vmatpush1.bf16.msra.mxu0 %v2748_v42  ;;  %v1400_v43 = vpop.f32.mrb[10].mxu0  ;;  %v1849_v42 = vld [vmem:[#allocation5 + $0x518] sm:$0xff] }
 0x4d9   :  { %2751 = vmatprep.subr.bf16.mxu0 %v2750_v44  ;;  %v1402_v61 = vpop.f32.mrb[11].mxu0  ;;  %v2778_v46 = vpack.c.bf16 %v1849_v42, %v1847_v41  ;;  %v1876_v41 = vld [vmem:[#allocation5 + $0x5f0] sm:$0xff] }
 0x4da   :  { %1794 = vmatprep.mubr.f32.mxu0 %v1402_v61  ;;  %v1852_v61 = vld [vmem:[#allocation5 + $0x530] sm:$0xff]  ;;  %v2808_v42 = vpack.c.bf16 %v1876_v41, %v1874_v32  ;;  %v2093_v41 = vld [vmem:[%s3601_s9 + $0x38] sm:$0xff] }
 0x4db   :  { %1795 = vmatmul.mubr.f32.gmra.mrb[26].mxu0 %v1400_v43  ;;  %v1853_v43 = vld [vmem:[#allocation5 + $0x538] sm:$0xff]  ;;  %v2092_v32 = vld [vmem:[%s3601_s9 + $0x30] sm:$0xff] }
 0x4dc   :  { %2753 = vmatpush1.bf16.msra.mxu0 %v2752_v39  ;;  %v1406_v8 = vpop.f32.mrb[12].mxu0  ;;  %v1851_v39 = vld [vmem:[#allocation5 + $0x528] sm:$0xff] }
 0x4dd   :  { %2755 = vmatprep.subr.bf16.mxu0 %v2754_v57  ;;  %v1408_v0 = vpop.f32.mrb[13].mxu0  ;;  %v2780_v57 = vpack.c.bf16 %v1848_v25, %v1846_v11  ;;  %v2782_v59 = vpack.c.bf16 %v1853_v43, %v1851_v39 }
 0x4de   :  { %1800 = vmatprep.mubr.f32.mxu0 %v1408_v0  ;;  %v1861_v0 = vld [vmem:[#allocation5 + $0x578] sm:$0xff] }
 0x4df   :  { %1801 = vmatmul.mubr.f32.gmra.mrb[28].mxu0 %v1406_v8  ;;  %v2786_v8 = vpack.c.bf16 %v1857_v1, %v1855_v62  ;;  %v2790_v12 = vpack.c.bf16 %v1861_v0, %v1859_v10 }
 0x4e0   :  { %2757 = vmatpush1.bf16.msra.mxu0 %v2756_v7  ;;  %v1412_v58 = vpop.f32.mrb[14].mxu0  ;;  %v2784_v7 = vpack.c.bf16 %v1852_v61, %v1850_v60 }
 0x4e1   :  { %2759 = vmatprep.subr.bf16.mxu0 %v2758_v29  ;;  %v1414_v14 = vpop.f32.mrb[15].mxu0  ;;  %v1854_v29 = vld [vmem:[#allocation5 + $0x540] sm:$0xff] }
 0x4e2   :  { %1806 = vmatprep.mubr.f32.mxu0 %v1414_v14  ;;  %v2788_v30 = vpack.c.bf16 %v1856_v9, %v1854_v29 }
 0x4e3   :  { %1807 = vmatmul.mubr.f32.gmra.mrb[30].mxu0 %v1412_v58  ;;  %v1860_v58 = vld [vmem:[#allocation5 + $0x570] sm:$0xff] }
 0x4e4   :  { %2761 = vmatpush1.bf16.msra.mxu0 %v2760_v28  ;;  %v3452_v4 = vpop.f32.mrb[16].mxu0  ;;  %v1858_v28 = vld [vmem:[#allocation5 + $0x560] sm:$0xff] }
 0x4e5   :  { %2763 = vmatprep.subr.bf16.mxu0 %v2762_v49  ;;  %v1485_v20 = vpop.f32.mrb[17].mxu0  ;;  %v1863_v49 = vld [vmem:[#allocation5 + $0x588] sm:$0xff]  ;;  %v2792_v13 = vpack.c.bf16 %v1860_v58, %v1858_v28 }
 0x4e6   :  { %1942 = vmatprep.mubr.f32.mxu0 %v1485_v20  ;;  %v2794_v14 = vpack.c.bf16 %v1865_v56, %v1863_v49  ;;  %v1866_v20 = vld [vmem:[#allocation5 + $0x5a0] sm:$0xff] }
 0x4e7   :  { %v2102_v49 = vld [vmem:[%s3601_s9 + $0x80] sm:$0xff] }
 0x4e8   :  { %2765 = vmatpush1.bf16.msra.mxu0 %v2764_v6  ;;  %v3454_v2 = vpop.f32.mrb[18].mxu0  ;;  %v1867_v6 = vld [vmem:[#allocation5 + $0x5a8] sm:$0xff] }
 0x4e9   :  { %2767 = vmatprep.subr.bf16.mxu0 %v2766_v15  ;;  %v3456_v47 = vpop.f32.mrb[19].mxu0  ;;  %v1869_v15 = vld [vmem:[#allocation5 + $0x5b8] sm:$0xff] }
 0x4ea   :  { %v2798_v37 = vpack.c.bf16 %v1869_v15, %v1867_v6  ;;  %v2105_v6 = vld [vmem:[%s3601_s9 + $0x98] sm:$0xff]  ;;  %v2011_v15 = vld [vmem:[%s3600_s8] sm:$0x3] }
 0x4ec   :  { %2769 = vmatpush1.bf16.msra.mxu0 %v2768_v23  ;;  %v3458_v21 = vpop.f32.mrb[20].mxu0  ;;  %v1873_v23 = vld [vmem:[#allocation5 + $0x5d8] sm:$0xff] }
 0x4ed   :  { %2771 = vmatprep.subr.bf16.mxu0 %v2770_v22  ;;  %v3460_v33 = vpop.f32.mrb[21].mxu0  ;;  %v2800_v22 = vpack.c.bf16 %v1868_v63, %v1866_v20  ;;  %v2802_v24 = vpack.c.bf16 %v1873_v23, %v1871_v5  ;;  %v2088_v20 = vld [vmem:[%s3601_s9 + $0x10] sm:$0xff]  ;;  %v2089_v63 = vld [vmem:[%s3601_s9 + $0x18] sm:$0xff]  ;;  %v2106_v5 = vld [vmem:[%s3601_s9 + $0xa0] sm:$0xff] }
 0x4ee   :  { %v2107_v23 = vld [vmem:[%s3601_s9 + $0xa8] sm:$0xff] }
 0x4f0   :  { %2773 = vmatpush1.bf16.msra.mxu0 %v2772_v27  ;;  %v3462_v44 = vpop.f32.mrb[22].mxu0  ;;  %v1877_v27 = vld [vmem:[#allocation5 + $0x5f8] sm:$0xff] }
 0x4f1   :  { %2775 = vmatprep.subr.bf16.mxu0 %v2774_v3  ;;  %v3464_v18 = vpop.f32.mrb[23].mxu0  ;;  %v2804_v3 = vpack.c.bf16 %v1872_v55, %v1870_v38  ;;  %v2806_v31 = vpack.c.bf16 %v1877_v27, %v1875_v26  ;;  %v2090_v38 = vld [vmem:[%s3601_s9 + $0x20] sm:$0xff]  ;;  %v2091_v55 = vld [vmem:[%s3601_s9 + $0x28] sm:$0xff]  ;;  %v2108_v26 = vld [vmem:[%s3601_s9 + $0xb0] sm:$0xff] }
 0x4f2   :  { %v2109_v27 = vld [vmem:[%s3601_s9 + $0xb8] sm:$0xff] }
 0x4f4   :  { %2777 = vmatpush1.bf16.msra.mxu0 %v2776_v45  ;;  %v1975_v45 = vld [vmem:[%s3598_s6] sm:$0x3] }
 0x4f5   :  { %2779 = vmatprep.subr.bf16.mxu0 %v2778_v46  ;;  %v1980_v46 = vrot.slane %v1975_v45, %v3271_v19 }
 0x4f8   :  { %2781 = vmatpush1.bf16.msra.mxu0 %v2780_v57 }
 0x4f9   :  { %2783 = vmatprep.subr.bf16.mxu0 %v2782_v59 }
 0x4fc   :  { %2785 = vmatpush1.bf16.msra.mxu0 %v2784_v7 }
 0x4fd   :  { %2787 = vmatprep.subr.bf16.mxu0 %v2786_v8 }
 0x500   :  { %2789 = vmatpush1.bf16.msra.mxu0 %v2788_v30 }
 0x501   :  { %2791 = vmatprep.subr.bf16.mxu0 %v2790_v12 }
 0x504   :  { %2793 = vmatpush1.bf16.msra.mxu0 %v2792_v13 }
 0x505   :  { %2795 = vmatprep.subr.bf16.mxu0 %v2794_v14 }
 0x508   :  { %2797 = vmatpush1.bf16.msra.mxu0 %v2796_v16 }
 0x509   :  { %2799 = vmatprep.subr.bf16.mxu0 %v2798_v37  ;;  %v2822_v37 = vpack.c.bf16 %v2105_v6, %v2104_v50 }
 0x50c   :  { %2801 = vmatpush1.bf16.msra.mxu0 %v2800_v22  ;;  %v2824_v22 = vpack.c.bf16 %v2089_v63, %v2088_v20 }
 0x50d   :  { %2803 = vmatprep.subr.bf16.mxu0 %v2802_v24  ;;  %v2826_v24 = vpack.c.bf16 %v2107_v23, %v2106_v5 }
 0x510   :  { %2805 = vmatpush1.bf16.msra.mxu0 %v2804_v3  ;;  %v2828_v3 = vpack.c.bf16 %v2091_v55, %v2090_v38 }
 0x511   :  { %2807 = vmatprep.subr.bf16.mxu0 %v2806_v31  ;;  %v2830_v31 = vpack.c.bf16 %v2109_v27, %v2108_v26 }
 0x514   :  { %2809 = vmatpush1.bf16.msra.mxu0 %v2808_v42  ;;  %v2110_v42 = vld [vmem:[%s3601_s9 + $0xc0] sm:$0xff] }
 0x517   :  { %1943 = vmatmul.mubr.f32.vlgmr.msra.gmra.mrb[24].mxu0 %v3452_v4  ;;  %v1984_v4 = vrot.slane %v1975_v45, %v3266_v17  ;;  %v2111_v45 = vld [vmem:[%s3601_s9 + $0xc8] sm:$0xff] }
 0x518   :  { %1948 = vmatprep.mubr.f32.mxu0 %v3456_v47 }
 0x51b   :  { %1949 = vmatmul.mubr.f32.gmra.mrb[26].mxu0 %v3454_v2 }
 0x51c   :  { %1954 = vmatprep.mubr.f32.mxu0 %v3460_v33 }
 0x51f   :  { %1955 = vmatmul.mubr.f32.gmra.mrb[28].mxu0 %v3458_v21 }
 0x520   :  { %1960 = vmatprep.mubr.f32.mxu0 %v3464_v18 }
 0x523   :  { %1961 = vmatmul.mubr.f32.gmra.mrb[30].mxu0 %v3462_v44 }
 0x5ea   :  { %v1944_v11 = vpop.f32.mrb[24].mxu0 }
 0x5eb   :  { %v1987_v47 = vadd.f32 %v1980_v46, %v1944_v11  ;;  %v1946_v25 = vpop.f32.mrb[25].mxu0  ;;  %v2094_v11 = vld [vmem:[%s3601_s9 + $0x40] sm:$0xff] }
 0x5ec   :  { %v1988_v2 = vadd.f32 %v1984_v4, %v1946_v25  ;;  %v2112_v25 = vld [vmem:[%s3601_s9 + $0xd0] sm:$0xff] }
 0x5ed   :  { %v1995_v33 = vadd.f32 %v1987_v47, %v3281_v40  ;;  %v2095_v47 = vld [vmem:[%s3601_s9 + $0x48] sm:$0xff] }
 0x5ee   :  { %v1950_v39 = vpop.f32.mrb[26].mxu0  ;;  %v1996_v18 = vadd.f32 %v1988_v2, %v3277_v35  ;;  %v2113_v2 = vld [vmem:[%s3601_s9 + $0xd8] sm:$0xff] }
 0x5ef   :  { %v1989_v21 = vadd.f32 %v1980_v46, %v1950_v39  ;;  %v1952_v43 = vpop.f32.mrb[27].mxu0  ;;  %v2003_v19 = vmax.f32 %v1995_v33, 0.0  ;;  %v2836_v39 = vpack.c.bf16 %v2095_v47, %v2094_v11  ;;  %v2838_v33 = vpack.c.bf16 %v2113_v2, %v2112_v25 }
 0x5f0   :  { %v1990_v44 = vadd.f32 %v1984_v4, %v1952_v43  ;;  %v2004_v1 = vmax.f32 %v1996_v18, 0.0  ;;  %v2097_v43 = vld [vmem:[%s3601_s9 + $0x58] sm:$0xff]  ;;  %v2114_v18 = vld [vmem:[%s3601_s9 + $0xe0] sm:$0xff] }
 0x5f1   :  { %v1997_v57 = vadd.f32 %v1989_v21, %v3275_v34  ;;  %v2096_v21 = vld [vmem:[%s3601_s9 + $0x50] sm:$0xff] }
 0x5f2   :  { %v1998_v59 = vadd.f32 %v1990_v44, %v3279_v36  ;;  %v1956_v60 = vpop.f32.mrb[28].mxu0  ;;  %v2115_v44 = vld [vmem:[%s3601_s9 + $0xe8] sm:$0xff] }
 0x5f3   :  { %v2005_v61 = vmax.f32 %v1997_v57, 0.0  ;;  %v1991_v17 = vadd.f32 %v1980_v46, %v1956_v60  ;;  %v1958_v62 = vpop.f32.mrb[29].mxu0  ;;  %v2840_v57 = vpack.c.bf16 %v2097_v43, %v2096_v21  ;;  %v2098_v60 = vld [vmem:[%s3601_s9 + $0x60] sm:$0xff] }
 0x5f4   :  { %v2006_v7 = vmax.f32 %v1998_v59, 0.0  ;;  %v1992_v8 = vadd.f32 %v1984_v4, %v1958_v62  ;;  %v2842_v59 = vpack.c.bf16 %v2115_v44, %v2114_v18 }
 0x5f5   :  { %v2812_v29 = vpack.c.bf16 %v2005_v61, %v2003_v19  ;;  %v1999_v10 = vadd.f32 %v1991_v17, %v3293_v54  ;;  %v2103_v54 = vld [vmem:[%s3601_s9 + $0x88] sm:$0xff]  ;;  %v2116_v61 = vld [vmem:[%s3601_s9 + $0xf0] sm:$0xff]  ;;  %v2117_v17 = vld [vmem:[%s3601_s9 + $0xf8] sm:$0xff] }
 0x5f6   :  { %v1962_v9 = vpop.f32.mrb[30].mxu0  ;;  %v2810_v40 = vpack.c.bf16 %v2006_v7, %v2004_v1  ;;  %v2000_v30 = vadd.f32 %v1992_v8, %v3289_v52  ;;  %v2818_v48 = vpack.c.bf16 %v2103_v54, %v2102_v49  ;;  %v2099_v19 = vld [vmem:[%s3601_s9 + $0x68] sm:$0xff]  ;;  %v2846_v1 = vpack.c.bf16 %v2117_v17, %v2116_v61  ;;  %v2100_v7 = vld [vmem:[%s3601_s9 + $0x70] sm:$0xff]  ;;  %v2101_v8 = vld [vmem:[%s3601_s9 + $0x78] sm:$0xff] }
 0x5f7   :  { %v1993_v0 = vadd.f32 %v1980_v46, %v1962_v9  ;;  %v1964_v35 = vpop.f32.mrb[31].mxu0  ;;  %v2007_v28 = vmax.f32 %v1999_v10, 0.0  ;;  %v2832_v46 = vpack.c.bf16 %v2093_v41, %v2092_v32  ;;  %v2844_v62 = vpack.c.bf16 %v2099_v19, %v2098_v60 }
 0x5f8   :  { %v1994_v34 = vadd.f32 %v1984_v4, %v1964_v35  ;;  %2811 = vmatprep.subr.bf16.mxu1 %v2810_v40  ;;  %v2008_v56 = vmax.f32 %v2000_v30, 0.0  ;;  %v2834_v4 = vpack.c.bf16 %v2111_v45, %v2110_v42 }
 0x5f9   :  { %v2001_v36 = vadd.f32 %v1993_v0, %v3287_v51  ;;  %2813 = vmatpush1.bf16.msra.mxu1 %v2812_v29  ;;  %v2086_v51 = vld [vmem:[%s3601_s9] sm:$0xff]  ;;  %v2848_v29 = vpack.c.bf16 %v2101_v8, %v2100_v7  ;;  %v2119_v0 = vstv %s3602_s10 }
 0x5fa   :  { %v2002_v12 = vadd.f32 %v1994_v34, %v3291_v53  ;;  %v2087_v53 = vld [vmem:[%s3601_s9 + $0x8] sm:$0xff] }
 0x5fb   :  { %v2009_v58 = vmax.f32 %v2001_v36, 0.0  ;;  %v2820_v16 = vpack.c.bf16 %v2087_v53, %v2086_v51 }
 0x5fc   :  { %v2010_v13 = vmax.f32 %v2002_v12, 0.0 }
 0x5fd   :  { %v2816_v52 = vpack.c.bf16 %v2009_v58, %v2007_v28 }
 0x5fe   :  { %v2814_v14 = vpack.c.bf16 %v2010_v13, %v2008_v56 }
 0x600   :  { %2815 = vmatprep.subr.bf16.mxu1 %v2814_v14 }
 0x601   :  { %2817 = vmatpush1.bf16.msra.mxu1 %v2816_v52 }
 0x602   :  { %2819 = vmatprep.subr.bf16.mxu1 %v2818_v48 }
 0x604   :  { %2262 = vmatmul.mubr.msk.f32.vlgmr.msra.gmra.mrb[32].mxu1 %vm80_vm0, %v2011_v15 }
 0x605   :  { %2821 = vmatpush3.bf16.msra.mxu1 %v2820_v16 }
 0x606   :  { %2823 = vmatprep.subr.bf16.mxu1 %v2822_v37 }
 0x609   :  { %2825 = vmatpush3.bf16.msra.mxu1 %v2824_v22 }
 0x60a   :  { %2827 = vmatprep.subr.bf16.mxu1 %v2826_v24 }
 0x60d   :  { %2829 = vmatpush3.bf16.msra.mxu1 %v2828_v3 }
 0x60e   :  { %2831 = vmatprep.subr.bf16.mxu1 %v2830_v31 }
 0x611   :  { %2833 = vmatpush3.bf16.msra.mxu1 %v2832_v46 }
 0x612   :  { %2835 = vmatprep.subr.bf16.mxu1 %v2834_v4 }
 0x615   :  { %2837 = vmatpush3.bf16.msra.mxu1 %v2836_v39 }
 0x616   :  { %2839 = vmatprep.subr.bf16.mxu1 %v2838_v33 }
 0x619   :  { %2841 = vmatpush3.bf16.msra.mxu1 %v2840_v57 }
 0x61a   :  { %2843 = vmatprep.subr.bf16.mxu1 %v2842_v59 }
 0x61d   :  { %2845 = vmatpush3.bf16.msra.mxu1 %v2844_v62 }
 0x61e   :  { %2847 = vmatprep.subr.bf16.mxu1 %v2846_v1 }
 0x621   :  { %2849 = vmatpush3.bf16.msra.mxu1 %v2848_v29 }
 0x6d7   :  { %v2081_v9 = vpop.f32.mrb[32].mxu1 }
 0x6d8   :  { %v2083_v40 = vpop.f32.mrb[33].mxu1 }
 0x6d9   :  { %2184 = vmatprep.mubr.f32.mxu1 %v2083_v40 }
 0x6da   :  { %2185 = vmatmul.mubr.f32.vlgmr.msra.gmra.mrb[34].mxu1 %v2081_v9 }
 0x7ad   :  { %v2311_v10 = vpop.f32.mrb[34].mxu1 }
 0x7ae   :  { %v2312_v35 = vpop.f32.mrb[35].mxu1 }
 0x7af   :  { %v2313_v30 = vadd.f32 %v2312_v35, %v2311_v10 }
 0x7b1   :  { %v2187_v34 = vadd.f32 %v2313_v30, %v2119_v0 }
 0x7b3   :  { %2191 = vst.msk [vmem:[%s3603_s11] sm:$0x3] %vm2190_vm2, %v2187_v34 }
 0x7b4   :  { %2196 = vsyncpa [#allocation4], 1 }
 0x7b5   :  { %2197 = vsyncpa [#allocation6], 1 }

</bundles_post_ra>
